<compile_context>
chip_gen: v6e
topology: v6e:2x2x1
jax: 0.10.0
libtpu: 0.0.40
codegen_flags: <defaults>
</compile_context>

<pallas_src>
import jax
import jax.numpy as jnp
from jax import lax
from jax.experimental import pallas as pl
from jax.experimental.pallas import tpu as pltpu

# ---- model hyper-params (small but consistent with the module) ----
DIM = 64                      # embedding dim C
NUM_HEADS = 1                 # TODO(synk): for NUM_HEADS > 1 use batched [bk,h,n,d] einsums
HEAD_DIM = DIM // NUM_HEADS   # must be 64: get_rope hard-codes rope dim 32 -> 64 channels
AHD = NUM_HEADS * HEAD_DIM
MLP_RATIO = 4 * 2 / 3
HIDDEN = int(DIM * MLP_RATIO)                     # SwiGLU hidden dim = int(dim * 8/3) = 170
HIDDEN_PAD = ((HIDDEN + 127) // 128) * 128        # 256 : lane-dense padded hidden width
EPS = 1e-6
TARGET_ROWS = 1024            # aim for 512-1024 token rows per grid step


# ----------------------------- kernel helpers -----------------------------
def _layernorm(x, g, b):
    mu = jnp.mean(x, axis=-1, keepdims=True)
    xc = x - mu
    var = jnp.mean(xc * xc, axis=-1, keepdims=True)
    return xc * lax.rsqrt(var + EPS) * g + b


# ----------------------------- the Pallas kernel -----------------------------
def _make_block_kernel(bk, n):
    """Kernel processing bk batch elements (bk*n token rows) per grid step."""
    rows = bk * n

    def kernel(x_ref, cos_ref, sin_ref,
               n1g_ref, n1b_ref,
               wqkv_ref, bqkv_ref,
               wp_ref, bp_ref,
               n2g_ref, n2b_ref,
               w12_ref, b12_ref,
               lng_ref, lnb_ref,
               w3_ref, b3_ref,
               o_ref):
        x = x_ref[...]                    # [rows, C] f32
        cos3 = cos_ref[...][None, :, :]   # [1, n, HEAD_DIM] (half-split layout)
        sin3 = sin_ref[...][None, :, :]   # [1, n, HEAD_DIM] (half-split, sign folded in)

        # ---------------- norm1 + fused QKV GEMM ----------------
        xn = _layernorm(x, n1g_ref[...], n1b_ref[...])
        qkv = jnp.dot(xn.astype(jnp.bfloat16), wqkv_ref[...],
                      preferred_element_type=jnp.float32) + bqkv_ref[...]

        scale = HEAD_DIM ** -0.5
        half = HEAD_DIM // 2
        # NUM_HEADS == 1: straight-line single-head attention.
        q = qkv[:, 0 * AHD:1 * AHD] * scale      # fold softmax scale into q (O(rows*D))
        k = qkv[:, 1 * AHD:2 * AHD]              # k has no bias (zeros folded into bqkv)
        v = qkv[:, 2 * AHD:3 * AHD]

        # RoPE in half-split layout:  t*cos + roll(t, D/2)*sin_signed
        q_r = pltpu.roll(q, shift=half, axis=1)
        k_r = pltpu.roll(k, shift=half, axis=1)

        q3 = q.reshape(bk, n, HEAD_DIM)
        k3 = k.reshape(bk, n, HEAD_DIM)
        qr3 = q_r.reshape(bk, n, HEAD_DIM)
        kr3 = k_r.reshape(bk, n, HEAD_DIM)
        v3 = v.reshape(bk, n, HEAD_DIM).astype(jnp.bfloat16)

        qh = (q3 * cos3 + qr3 * sin3).astype(jnp.bfloat16)
        kh = (k3 * cos3 + kr3 * sin3).astype(jnp.bfloat16)

        # softmax(q k^T) v with the normalization applied AFTER the PV matmul
        logits = jnp.einsum('bqd,bkd->bqk', qh, kh,
                            preferred_element_type=jnp.float32)
        m = jnp.max(logits, axis=-1, keepdims=True)
        p = jnp.exp(logits - m)
        l = jnp.sum(p, axis=-1, keepdims=True)
        oh = jnp.einsum('bqk,bkd->bqd', p.astype(jnp.bfloat16), v3,
                        preferred_element_type=jnp.float32)
        # approx=True -> EUP slot; rows sum to 1 only to ~1e-3 relative accuracy.
        oh = oh * pl.reciprocal(l, approx=True)

        attn = oh.reshape(rows, HEAD_DIM)
        attn = jnp.dot(attn.astype(jnp.bfloat16), wp_ref[...],
                       preferred_element_type=jnp.float32) + bp_ref[...]

        x = x + attn

        # ---------------- norm2 + fused SwiGLU MLP (lane-padded hidden) ----------------
        xn2 = _layernorm(x, n2g_ref[...], n2b_ref[...])
        x12 = jnp.dot(xn2.astype(jnp.bfloat16), w12_ref[...],
                      preferred_element_type=jnp.float32) + b12_ref[...]
        x1 = x12[:, :HIDDEN_PAD]
        x2 = x12[:, HIDDEN_PAD:]
        hidden = (x1 * jax.nn.sigmoid(x1)) * x2      # SiLU(x1)*x2; padded lanes exactly 0

        # ffn_ln over the real HIDDEN lanes: masked two-pass (x - mu)^2 variance,
        # padded lanes zeroed before the second pass (no E[x^2]-E[x]^2 cancellation).
        inv_h = 1.0 / HIDDEN
        lane = lax.broadcasted_iota(jnp.int32, (1, HIDDEN_PAD), 1)
        lane_mask = lane < HIDDEN
        mu = jnp.sum(hidden, axis=-1, keepdims=True) * inv_h
        xc = jnp.where(lane_mask, hidden - mu, 0.0)
        var = jnp.sum(xc * xc, axis=-1, keepdims=True) * inv_h
        # gamma/beta are zero-padded, so padded lanes come out exactly 0 again.
        hln = xc * lax.rsqrt(var + EPS) * lng_ref[...] + lnb_ref[...]
        mlp = jnp.dot(hln.astype(jnp.bfloat16), w3_ref[...],
                      preferred_element_type=jnp.float32) + b3_ref[...]

        o_ref[...] = x + mlp

    return kernel


# ----------------------------- one-time weight / rope prep -----------------------------
def _perm_head():
    # interleaved (even/odd) -> half-split layout permutation for one head
    return jnp.concatenate([jnp.arange(0, HEAD_DIM, 2), jnp.arange(1, HEAD_DIM, 2)])


def prepare_block_params(params):
    """Fuse / permute / pad the Block weights. Run ONCE per model (hoisted out of
    the per-call path)."""
    (n1g, n1b, wq, wk, wv, qb, vb, wp, bp,
     n2g, n2b, w1, b1, w2, b2, lng, lnb, w3, b3) = params

    perm_head = _perm_head()
    perm = jnp.concatenate([h * HEAD_DIM + perm_head for h in range(NUM_HEADS)])

    # fused QKV (q/k weight columns + q bias permuted to half-split layout)
    wqkv = jnp.concatenate([wq[:, perm], wk[:, perm], wv], axis=1).astype(jnp.bfloat16)
    bqkv = jnp.concatenate([qb[:, perm], jnp.zeros_like(qb), vb], axis=1)

    # fused, lane-padded SwiGLU weights
    padh = HIDDEN_PAD - HIDDEN
    w12 = jnp.concatenate([jnp.pad(w1, ((0, 0), (0, padh))),
                           jnp.pad(w2, ((0, 0), (0, padh)))], axis=1).astype(jnp.bfloat16)
    b12 = jnp.concatenate([jnp.pad(b1, ((0, 0), (0, padh))),
                           jnp.pad(b2, ((0, 0), (0, padh)))], axis=1)
    lng_p = jnp.pad(lng, ((0, 0), (0, padh)))
    lnb_p = jnp.pad(lnb, ((0, 0), (0, padh)))
    w3_p = jnp.pad(w3, ((0, padh), (0, 0))).astype(jnp.bfloat16)
    wp_b = wp.astype(jnp.bfloat16)

    return (n1g, n1b, wqkv, bqkv, wp_b, bp,
            n2g, n2b, w12, b12, lng_p, lnb_p, w3_p, b3)


def make_rope(H, W):
    """get_rope precompute: interleaved cos/sin tables of shape (H*W, 64)."""
    rope_dim = 32          # hard-coded in get_rope
    pt_seq_len = 16
    theta = 10000.0
    freqs = 1.0 / (theta ** (jnp.arange(0, rope_dim, 2, dtype=jnp.float32) / rope_dim))  # [16]
    tH = jnp.arange(H, dtype=jnp.float32) / H * pt_seq_len
    tW = jnp.arange(W, dtype=jnp.float32) / W * pt_seq_len
    fH = jnp.repeat(tH[:, None] * freqs[None, :], 2, axis=-1)   # [H, 32]
    fW = jnp.repeat(tW[:, None] * freqs[None, :], 2, axis=-1)   # [W, 32]
    f = jnp.concatenate(
        [jnp.broadcast_to(fH[:, None, :], (H, W, rope_dim)),
         jnp.broadcast_to(fW[None, :, :], (H, W, rope_dim))], axis=-1)  # [H, W, 64]
    f = f.reshape(H * W, 2 * rope_dim)
    return jnp.cos(f), jnp.sin(f)


def prepare_rope(H, W):
    """RoPE tables in half-split layout with the rotate_half sign folded into sin.
    Run ONCE per (H, W); shape (N, HEAD_DIM) — broadcast over batch inside the kernel."""
    cos, sin = make_rope(H, W)
    perm_head = _perm_head()
    sign = jnp.concatenate([-jnp.ones((HEAD_DIM // 2,), jnp.float32),
                            jnp.ones((HEAD_DIM // 2,), jnp.float32)])
    return cos[:, perm_head], sin[:, perm_head] * sign[None, :]


# ----------------------------- per-call wrapper -----------------------------
def vit_block(x, prepared, cos_hs, sin_hs):
    B, H, W, C = x.shape
    assert C == DIM
    N = H * W
    # Rows per grid step: fill the pipeline (~TARGET_ROWS token rows), but keep at
    # least 2 grid steps when B >= 2 so both v7x TensorCores get work.
    bk_cap = B // 2 if B >= 2 else 1
    BK = max(1, min(bk_cap, max(1, TARGET_ROWS // N)))
    while B % BK:
        BK -= 1
    R = BK * N

    x2d = x.reshape(B * N, C)
    consts = [cos_hs, sin_hs] + list(prepared)

    def const2d(arr):
        return pl.BlockSpec(arr.shape, lambda b: (0, 0))

    in_specs = [pl.BlockSpec((R, C), lambda b: (b, 0))] + [const2d(a) for a in consts]

    out = pl.pallas_call(
        _make_block_kernel(BK, N),
        out_shape=jax.ShapeDtypeStruct((B * N, C), jnp.float32),
        grid_spec=pltpu.PrefetchScalarGridSpec(
            num_scalar_prefetch=0,
            grid=(B // BK,),
            in_specs=in_specs,
            out_specs=pl.BlockSpec((R, C), lambda b: (b, 0)),
        ),
        compiler_params=pltpu.CompilerParams(
            dimension_semantics=("parallel",),
            vmem_limit_bytes=32 * 1024 * 1024,
        ),
    )(x2d, *consts)
    return out.reshape(B, H, W, C)


# ----------------------------- pure-JAX reference -----------------------------
def _ref_rotate_half(x):
    shp = x.shape
    xr = x.reshape(shp[:-1] + (shp[-1] // 2, 2))
    return jnp.stack([-xr[..., 1], xr[..., 0]], axis=-1).reshape(shp)


def ref_block(x, p, cos, sin):
    B, H, W, C = x.shape
    N = H * W
    xt = x.reshape(B, N, C)

    def ln(y, g, b):
        mu = y.mean(-1, keepdims=True)
        var = ((y - mu) ** 2).mean(-1, keepdims=True)
        return (y - mu) / jnp.sqrt(var + EPS) * g + b

    (n1g, n1b, wq, wk, wv, qb, vb, wp, bp,
     n2g, n2b, w1, b1, w2, b2, lng, lnb, w3, b3) = p
    shortcut = xt
    xn = ln(xt, n1g, n1b)
    q = xn @ wq + qb
    k = xn @ wk
    v = xn @ wv + vb

    def heads(t):
        return t.reshape(B, N, NUM_HEADS, HEAD_DIM).transpose(0, 2, 1, 3)
    q, k, v = heads(q), heads(k), heads(v)
    q = q * cos + _ref_rotate_half(q) * sin
    k = k * cos + _ref_rotate_half(k) * sin
    logits = jnp.einsum('bhqd,bhkd->bhqk', q, k) * (HEAD_DIM ** -0.5)
    attn = jax.nn.softmax(logits, axis=-1)
    out = jnp.einsum('bhqk,bhkd->bhqd', attn, v)
    out = out.transpose(0, 2, 1, 3).reshape(B, N, -1) @ wp + bp
    xt = shortcut + out

    xn2 = ln(xt, n2g, n2b)
    hid = jax.nn.silu(xn2 @ w1 + b1) * (xn2 @ w2 + b2)
    hid = ln(hid, lng, lnb)
    xt = xt + (hid @ w3 + b3)
    return xt.reshape(B, H, W, C)


# ----------------------------- main -----------------------------
if __name__ == "__main__":
    B, H, W, C = 2, 8, 8, DIM
    ahd = NUM_HEADS * HEAD_DIM

    key = jax.random.PRNGKey(0)
    keys = jax.random.split(key, 20)

    def rnd(k, shape, scale=0.02):
        return jax.random.normal(k, shape, jnp.float32) * scale

    # weights are stored pre-transposed as (in_features, out_features)
    params = (
        jnp.ones((1, C), jnp.float32),           # norm1 gamma
        jnp.zeros((1, C), jnp.float32),          # norm1 beta
        rnd(keys[0], (C, ahd)),                  # q_proj.weight^T
        rnd(keys[1], (C, ahd)),                  # k_proj.weight^T
        rnd(keys[2], (C, ahd)),                  # v_proj.weight^T
        rnd(keys[3], (1, ahd)),                  # q_bias
        rnd(keys[4], (1, ahd)),                  # v_bias
        rnd(keys[5], (ahd, C)),                  # proj.weight^T
        rnd(keys[6], (1, C)),                    # proj.bias
        jnp.ones((1, C), jnp.float32),           # norm2 gamma
        jnp.zeros((1, C), jnp.float32),          # norm2 beta
        rnd(keys[7], (C, HIDDEN)),               # w1.weight^T
        rnd(keys[8], (1, HIDDEN)),               # w1.bias
        rnd(keys[9], (C, HIDDEN)),               # w2.weight^T
        rnd(keys[10], (1, HIDDEN)),              # w2.bias
        jnp.ones((1, HIDDEN), jnp.float32),      # ffn_ln gamma
        jnp.zeros((1, HIDDEN), jnp.float32),     # ffn_ln beta
        rnd(keys[11], (HIDDEN, C)),              # w3.weight^T
        rnd(keys[12], (1, C)),                   # w3.bias
    )

    x = jax.random.normal(keys[13], (B, H, W, C), jnp.float32)

    # one-time prep (hoisted out of the per-call path)
    prepared = jax.tree_util.tree_map(jax.block_until_ready, prepare_block_params(params))
    cos_hs, sin_hs = prepare_rope(H, W)
    cos_hs, sin_hs = jax.block_until_ready(cos_hs), jax.block_until_ready(sin_hs)

    out = vit_block(x, prepared, cos_hs, sin_hs)
    out = jax.block_until_ready(out)

    cos, sin = make_rope(H, W)
    ref = jax.block_until_ready(ref_block(x, params, cos, sin))
    max_err = float(jnp.max(jnp.abs(out - ref)))
    assert out.shape == (B, H, W, C)
    assert max_err < 2e-2, f"mismatch vs reference: {max_err}"

    print("KERNEL_OK")
</pallas_src>

<mosaic_0001>
module attributes {stable_mosaic.version = 11 : i64} {
  func.func @kernel(%arg0: i32, %arg1: memref<64x64xf32, #tpu.memory_space<vmem>>, %arg2: memref<64x64xf32, #tpu.memory_space<vmem>>, %arg3: memref<64x64xf32, #tpu.memory_space<vmem>>, %arg4: memref<1x64xf32, #tpu.memory_space<vmem>>, %arg5: memref<1x64xf32, #tpu.memory_space<vmem>>, %arg6: memref<64x192xbf16, #tpu.memory_space<vmem>>, %arg7: memref<1x192xf32, #tpu.memory_space<vmem>>, %arg8: memref<64x64xbf16, #tpu.memory_space<vmem>>, %arg9: memref<1x64xf32, #tpu.memory_space<vmem>>, %arg10: memref<1x64xf32, #tpu.memory_space<vmem>>, %arg11: memref<1x64xf32, #tpu.memory_space<vmem>>, %arg12: memref<64x512xbf16, #tpu.memory_space<vmem>>, %arg13: memref<1x512xf32, #tpu.memory_space<vmem>>, %arg14: memref<1x256xf32, #tpu.memory_space<vmem>>, %arg15: memref<1x256xf32, #tpu.memory_space<vmem>>, %arg16: memref<256x64xbf16, #tpu.memory_space<vmem>>, %arg17: memref<1x64xf32, #tpu.memory_space<vmem>>, %arg18: memref<64x64xf32, #tpu.memory_space<vmem>>) attributes {dimension_semantics = [#tpu.dimension_semantics<parallel>], iteration_bounds = array<i64: 2>, scalar_prefetch = 0 : i64, scratch_operands = 0 : i64, tpu.core_type = #tpu.core_type<tc>, window_params = [{transform_indices = @transform_0, window_bounds = array<i64: 64, 64>}, {pipeline_mode = #tpu.pipeline_mode<synchronous>, transform_indices = @transform_1, window_bounds = array<i64: 64, 64>}, {pipeline_mode = #tpu.pipeline_mode<synchronous>, transform_indices = @transform_2, window_bounds = array<i64: 64, 64>}, {pipeline_mode = #tpu.pipeline_mode<synchronous>, transform_indices = @transform_3, window_bounds = array<i64: 1, 64>}, {pipeline_mode = #tpu.pipeline_mode<synchronous>, transform_indices = @transform_4, window_bounds = array<i64: 1, 64>}, {pipeline_mode = #tpu.pipeline_mode<synchronous>, transform_indices = @transform_5, window_bounds = array<i64: 64, 192>}, {pipeline_mode = #tpu.pipeline_mode<synchronous>, transform_indices = @transform_6, window_bounds = array<i64: 1, 192>}, {pipeline_mode = #tpu.pipeline_mode<synchronous>, transform_indices = @transform_7, window_bounds = array<i64: 64, 64>}, {pipeline_mode = #tpu.pipeline_mode<synchronous>, transform_indices = @transform_8, window_bounds = array<i64: 1, 64>}, {pipeline_mode = #tpu.pipeline_mode<synchronous>, transform_indices = @transform_9, window_bounds = array<i64: 1, 64>}, {pipeline_mode = #tpu.pipeline_mode<synchronous>, transform_indices = @transform_10, window_bounds = array<i64: 1, 64>}, {pipeline_mode = #tpu.pipeline_mode<synchronous>, transform_indices = @transform_11, window_bounds = array<i64: 64, 512>}, {pipeline_mode = #tpu.pipeline_mode<synchronous>, transform_indices = @transform_12, window_bounds = array<i64: 1, 512>}, {pipeline_mode = #tpu.pipeline_mode<synchronous>, transform_indices = @transform_13, window_bounds = array<i64: 1, 256>}, {pipeline_mode = #tpu.pipeline_mode<synchronous>, transform_indices = @transform_14, window_bounds = array<i64: 1, 256>}, {pipeline_mode = #tpu.pipeline_mode<synchronous>, transform_indices = @transform_15, window_bounds = array<i64: 256, 64>}, {pipeline_mode = #tpu.pipeline_mode<synchronous>, transform_indices = @transform_16, window_bounds = array<i64: 1, 64>}, {transform_indices = @transform_17, window_bounds = array<i64: 64, 64>}]} {
    %c0 = arith.constant 0 : index
    %c0_0 = arith.constant 0 : index
    %0 = vector.load %arg1[%c0, %c0_0] : memref<64x64xf32, #tpu.memory_space<vmem>>, vector<64x64xf32>
    %c0_1 = arith.constant 0 : index
    %c0_2 = arith.constant 0 : index
    %1 = vector.load %arg2[%c0_1, %c0_2] : memref<64x64xf32, #tpu.memory_space<vmem>>, vector<64x64xf32>
    %2 = vector.shape_cast %1 : vector<64x64xf32> to vector<1x64x64xf32>
    %c0_3 = arith.constant 0 : index
    %c0_4 = arith.constant 0 : index
    %3 = vector.load %arg3[%c0_3, %c0_4] : memref<64x64xf32, #tpu.memory_space<vmem>>, vector<64x64xf32>
    %4 = vector.shape_cast %3 : vector<64x64xf32> to vector<1x64x64xf32>
    %c0_5 = arith.constant 0 : index
    %c0_6 = arith.constant 0 : index
    %5 = vector.load %arg4[%c0_5, %c0_6] : memref<1x64xf32, #tpu.memory_space<vmem>>, vector<1x64xf32>
    %c0_7 = arith.constant 0 : index
    %c0_8 = arith.constant 0 : index
    %6 = vector.load %arg5[%c0_7, %c0_8] : memref<1x64xf32, #tpu.memory_space<vmem>>, vector<1x64xf32>
    %cst = arith.constant dense<0.000000e+00> : vector<64xf32>
    %7 = vector.multi_reduction <add>, %0, %cst [1] : vector<64x64xf32> to vector<64xf32>
    %8 = vector.shape_cast %7 : vector<64xf32> to vector<64x1xf32>
    %cst_9 = arith.constant 6.400000e+01 : f32
    %9 = vector.broadcast %cst_9 : f32 to vector<64x1xf32>
    %10 = arith.divf %8, %9 : vector<64x1xf32>
    %11 = vector.broadcast %10 : vector<64x1xf32> to vector<64x64xf32>
    %12 = arith.subf %0, %11 : vector<64x64xf32>
    %13 = arith.mulf %12, %12 : vector<64x64xf32>
    %cst_10 = arith.constant dense<0.000000e+00> : vector<64xf32>
    %14 = vector.multi_reduction <add>, %13, %cst_10 [1] : vector<64x64xf32> to vector<64xf32>
    %15 = vector.shape_cast %14 : vector<64xf32> to vector<64x1xf32>
    %cst_11 = arith.constant 6.400000e+01 : f32
    %16 = vector.broadcast %cst_11 : f32 to vector<64x1xf32>
    %17 = arith.divf %15, %16 : vector<64x1xf32>
    %cst_12 = arith.constant 9.99999997E-7 : f32
    %18 = vector.broadcast %cst_12 : f32 to vector<64x1xf32>
    %19 = arith.addf %17, %18 : vector<64x1xf32>
    %20 = math.rsqrt %19 : vector<64x1xf32>
    %21 = vector.broadcast %20 : vector<64x1xf32> to vector<64x64xf32>
    %22 = arith.mulf %12, %21 : vector<64x64xf32>
    %23 = vector.broadcast %5 : vector<1x64xf32> to vector<64x64xf32>
    %24 = arith.mulf %22, %23 : vector<64x64xf32>
    %25 = vector.broadcast %6 : vector<1x64xf32> to vector<64x64xf32>
    %26 = arith.addf %24, %25 : vector<64x64xf32>
    %27 = arith.truncf %26 : vector<64x64xf32> to vector<64x64xbf16>
    %c0_13 = arith.constant 0 : index
    %c0_14 = arith.constant 0 : index
    %28 = vector.load %arg6[%c0_13, %c0_14] : memref<64x192xbf16, #tpu.memory_space<vmem>>, vector<64x192xbf16>
    %cst_15 = arith.constant dense<0.000000e+00> : vector<64x192xf32>
    %29 = tpu.matmul %27, %28, %cst_15 {dimension_numbers = #tpu.dot_dimension_numbers<[1], [0], [0], [1], [0, 0, 1, 1], [], []>} : vector<64x64xbf16>, vector<64x192xbf16>, vector<64x192xf32> -> vector<64x192xf32>
    %c0_16 = arith.constant 0 : index
    %c0_17 = arith.constant 0 : index
    %30 = vector.load %arg7[%c0_16, %c0_17] : memref<1x192xf32, #tpu.memory_space<vmem>>, vector<1x192xf32>
    %31 = vector.broadcast %30 : vector<1x192xf32> to vector<64x192xf32>
    %32 = arith.addf %29, %31 : vector<64x192xf32>
    %33 = vector.extract_strided_slice %32 {offsets = [0, 0], sizes = [64, 64], strides = [1, 1]} : vector<64x192xf32> to vector<64x64xf32>
    %cst_18 = arith.constant 1.250000e-01 : f32
    %34 = vector.broadcast %cst_18 : f32 to vector<64x64xf32>
    %35 = arith.mulf %33, %34 : vector<64x64xf32>
    %36 = vector.extract_strided_slice %32 {offsets = [0, 64], sizes = [64, 64], strides = [1, 1]} : vector<64x192xf32> to vector<64x64xf32>
    %37 = vector.extract_strided_slice %32 {offsets = [0, 128], sizes = [64, 64], strides = [1, 1]} : vector<64x192xf32> to vector<64x64xf32>
    %c32_i32 = arith.constant 32 : i32
    %38 = tpu.dynamic_rotate %35 by %c32_i32 dim 1 : vector<64x64xf32>, i32 -> vector<64x64xf32>
    %c32_i32_19 = arith.constant 32 : i32
    %39 = tpu.dynamic_rotate %36 by %c32_i32_19 dim 1 : vector<64x64xf32>, i32 -> vector<64x64xf32>
    %40 = vector.shape_cast %35 : vector<64x64xf32> to vector<1x64x64xf32>
    %41 = vector.shape_cast %36 : vector<64x64xf32> to vector<1x64x64xf32>
    %42 = vector.shape_cast %38 : vector<64x64xf32> to vector<1x64x64xf32>
    %43 = vector.shape_cast %39 : vector<64x64xf32> to vector<1x64x64xf32>
    %44 = vector.shape_cast %37 : vector<64x64xf32> to vector<1x64x64xf32>
    %45 = arith.truncf %44 : vector<1x64x64xf32> to vector<1x64x64xbf16>
    %46 = arith.mulf %40, %2 : vector<1x64x64xf32>
    %47 = arith.mulf %42, %4 : vector<1x64x64xf32>
    %48 = arith.addf %46, %47 : vector<1x64x64xf32>
    %49 = arith.truncf %48 : vector<1x64x64xf32> to vector<1x64x64xbf16>
    %50 = arith.mulf %41, %2 : vector<1x64x64xf32>
    %51 = arith.mulf %43, %4 : vector<1x64x64xf32>
    %52 = arith.addf %50, %51 : vector<1x64x64xf32>
    %53 = arith.truncf %52 : vector<1x64x64xf32> to vector<1x64x64xbf16>
    "tpu.trace_start"() <{level = 10 : i32, message = "bqd,bkd->bqk"}> : () -> ()
    %cst_20 = arith.constant dense<0.000000e+00> : vector<1x64x64xf32>
    %54 = tpu.matmul %49, %53, %cst_20 {dimension_numbers = #tpu.dot_dimension_numbers<[2], [2], [1], [1], [0, 0, 0, 1, 1, 1], [0], [0]>} : vector<1x64x64xbf16>, vector<1x64x64xbf16>, vector<1x64x64xf32> -> vector<1x64x64xf32>
    "tpu.trace_stop"() : () -> ()
    %cst_21 = arith.constant dense<0xFF800000> : vector<1x64xf32>
    %55 = vector.multi_reduction <maximumf>, %54, %cst_21 [2] : vector<1x64x64xf32> to vector<1x64xf32>
    %56 = vector.shape_cast %55 : vector<1x64xf32> to vector<1x64x1xf32>
    %57 = vector.broadcast %56 : vector<1x64x1xf32> to vector<1x64x64xf32>
    %58 = arith.subf %54, %57 : vector<1x64x64xf32>
    %59 = math.exp %58 : vector<1x64x64xf32>
    %cst_22 = arith.constant dense<0.000000e+00> : vector<1x64xf32>
    %60 = vector.multi_reduction <add>, %59, %cst_22 [2] : vector<1x64x64xf32> to vector<1x64xf32>
    %61 = vector.shape_cast %60 : vector<1x64xf32> to vector<1x64x1xf32>
    %62 = arith.truncf %59 : vector<1x64x64xf32> to vector<1x64x64xbf16>
    "tpu.trace_start"() <{level = 10 : i32, message = "bqk,bkd->bqd"}> : () -> ()
    %cst_23 = arith.constant dense<0.000000e+00> : vector<1x64x64xf32>
    %63 = tpu.matmul %62, %45, %cst_23 {dimension_numbers = #tpu.dot_dimension_numbers<[2], [1], [1], [2], [0, 0, 0, 1, 1, 2], [0], [0]>} : vector<1x64x64xbf16>, vector<1x64x64xbf16>, vector<1x64x64xf32> -> vector<1x64x64xf32>
    "tpu.trace_stop"() : () -> ()
    %64 = tpu.reciprocal %61 {approx = true} : vector<1x64x1xf32> -> vector<1x64x1xf32>
    %65 = vector.broadcast %64 : vector<1x64x1xf32> to vector<1x64x64xf32>
    %66 = arith.mulf %63, %65 : vector<1x64x64xf32>
    %67 = vector.shape_cast %66 : vector<1x64x64xf32> to vector<64x64xf32>
    %68 = arith.truncf %67 : vector<64x64xf32> to vector<64x64xbf16>
    %c0_24 = arith.constant 0 : index
    %c0_25 = arith.constant 0 : index
    %69 = vector.load %arg8[%c0_24, %c0_25] : memref<64x64xbf16, #tpu.memory_space<vmem>>, vector<64x64xbf16>
    %cst_26 = arith.constant dense<0.000000e+00> : vector<64x64xf32>
    %70 = tpu.matmul %68, %69, %cst_26 {dimension_numbers = #tpu.dot_dimension_numbers<[1], [0], [0], [1], [0, 0, 1, 1], [], []>} : vector<64x64xbf16>, vector<64x64xbf16>, vector<64x64xf32> -> vector<64x64xf32>
    %c0_27 = arith.constant 0 : index
    %c0_28 = arith.constant 0 : index
    %71 = vector.load %arg9[%c0_27, %c0_28] : memref<1x64xf32, #tpu.memory_space<vmem>>, vector<1x64xf32>
    %72 = vector.broadcast %71 : vector<1x64xf32> to vector<64x64xf32>
    %73 = arith.addf %70, %72 : vector<64x64xf32>
    %74 = arith.addf %0, %73 : vector<64x64xf32>
    %c0_29 = arith.constant 0 : index
    %c0_30 = arith.constant 0 : index
    %75 = vector.load %arg10[%c0_29, %c0_30] : memref<1x64xf32, #tpu.memory_space<vmem>>, vector<1x64xf32>
    %c0_31 = arith.constant 0 : index
    %c0_32 = arith.constant 0 : index
    %76 = vector.load %arg11[%c0_31, %c0_32] : memref<1x64xf32, #tpu.memory_space<vmem>>, vector<1x64xf32>
    %cst_33 = arith.constant dense<0.000000e+00> : vector<64xf32>
    %77 = vector.multi_reduction <add>, %74, %cst_33 [1] : vector<64x64xf32> to vector<64xf32>
    %78 = vector.shape_cast %77 : vector<64xf32> to vector<64x1xf32>
    %cst_34 = arith.constant 6.400000e+01 : f32
    %79 = vector.broadcast %cst_34 : f32 to vector<64x1xf32>
    %80 = arith.divf %78, %79 : vector<64x1xf32>
    %81 = vector.broadcast %80 : vector<64x1xf32> to vector<64x64xf32>
    %82 = arith.subf %74, %81 : vector<64x64xf32>
    %83 = arith.mulf %82, %82 : vector<64x64xf32>
    %cst_35 = arith.constant dense<0.000000e+00> : vector<64xf32>
    %84 = vector.multi_reduction <add>, %83, %cst_35 [1] : vector<64x64xf32> to vector<64xf32>
    %85 = vector.shape_cast %84 : vector<64xf32> to vector<64x1xf32>
    %cst_36 = arith.constant 6.400000e+01 : f32
    %86 = vector.broadcast %cst_36 : f32 to vector<64x1xf32>
    %87 = arith.divf %85, %86 : vector<64x1xf32>
    %cst_37 = arith.constant 9.99999997E-7 : f32
    %88 = vector.broadcast %cst_37 : f32 to vector<64x1xf32>
    %89 = arith.addf %87, %88 : vector<64x1xf32>
    %90 = math.rsqrt %89 : vector<64x1xf32>
    %91 = vector.broadcast %90 : vector<64x1xf32> to vector<64x64xf32>
    %92 = arith.mulf %82, %91 : vector<64x64xf32>
    %93 = vector.broadcast %75 : vector<1x64xf32> to vector<64x64xf32>
    %94 = arith.mulf %92, %93 : vector<64x64xf32>
    %95 = vector.broadcast %76 : vector<1x64xf32> to vector<64x64xf32>
    %96 = arith.addf %94, %95 : vector<64x64xf32>
    %97 = arith.truncf %96 : vector<64x64xf32> to vector<64x64xbf16>
    %c0_38 = arith.constant 0 : index
    %c0_39 = arith.constant 0 : index
    %98 = vector.load %arg12[%c0_38, %c0_39] : memref<64x512xbf16, #tpu.memory_space<vmem>>, vector<64x512xbf16>
    %cst_40 = arith.constant dense<0.000000e+00> : vector<64x512xf32>
    %99 = tpu.matmul %97, %98, %cst_40 {dimension_numbers = #tpu.dot_dimension_numbers<[1], [0], [0], [1], [0, 0, 1, 1], [], []>} : vector<64x64xbf16>, vector<64x512xbf16>, vector<64x512xf32> -> vector<64x512xf32>
    %c0_41 = arith.constant 0 : index
    %c0_42 = arith.constant 0 : index
    %100 = vector.load %arg13[%c0_41, %c0_42] : memref<1x512xf32, #tpu.memory_space<vmem>>, vector<1x512xf32>
    %101 = vector.broadcast %100 : vector<1x512xf32> to vector<64x512xf32>
    %102 = arith.addf %99, %101 : vector<64x512xf32>
    %103 = vector.extract_strided_slice %102 {offsets = [0, 0], sizes = [64, 256], strides = [1, 1]} : vector<64x512xf32> to vector<64x256xf32>
    %104 = vector.extract_strided_slice %102 {offsets = [0, 256], sizes = [64, 256], strides = [1, 1]} : vector<64x512xf32> to vector<64x256xf32>
    %105 = arith.negf %103 : vector<64x256xf32>
    %106 = math.exp %105 : vector<64x256xf32>
    %cst_43 = arith.constant 1.000000e+00 : f32
    %107 = vector.broadcast %cst_43 : f32 to vector<64x256xf32>
    %108 = arith.addf %107, %106 : vector<64x256xf32>
    %109 = arith.divf %107, %108 : vector<64x256xf32>
    %110 = arith.mulf %103, %109 : vector<64x256xf32>
    %111 = arith.mulf %110, %104 : vector<64x256xf32>
    %112 = tpu.iota {dimensions = array<i32: 1>} : vector<1x256xi32>
    %c170_i32 = arith.constant 170 : i32
    %113 = vector.broadcast %c170_i32 : i32 to vector<1x256xi32>
    %114 = arith.cmpi slt, %112, %113 : vector<1x256xi32>
    %cst_44 = arith.constant dense<0.000000e+00> : vector<64xf32>
    %115 = vector.multi_reduction <add>, %111, %cst_44 [1] : vector<64x256xf32> to vector<64xf32>
    %116 = vector.shape_cast %115 : vector<64xf32> to vector<64x1xf32>
    %cst_45 = arith.constant 0.00588235306 : f32
    %117 = vector.broadcast %cst_45 : f32 to vector<64x1xf32>
    %118 = arith.mulf %116, %117 : vector<64x1xf32>
    %119 = vector.broadcast %118 : vector<64x1xf32> to vector<64x256xf32>
    %120 = arith.subf %111, %119 : vector<64x256xf32>
    %cst_46 = arith.constant 0.000000e+00 : f32
    %121 = vector.shape_cast %114 : vector<1x256xi1> to vector<1x256xi1>
    %122 = vector.broadcast %121 : vector<1x256xi1> to vector<64x256xi1>
    %123 = vector.broadcast %cst_46 : f32 to vector<64x256xf32>
    %124 = arith.select %122, %120, %123 : vector<64x256xi1>, vector<64x256xf32>
    %125 = arith.mulf %124, %124 : vector<64x256xf32>
    %cst_47 = arith.constant dense<0.000000e+00> : vector<64xf32>
    %126 = vector.multi_reduction <add>, %125, %cst_47 [1] : vector<64x256xf32> to vector<64xf32>
    %127 = vector.shape_cast %126 : vector<64xf32> to vector<64x1xf32>
    %cst_48 = arith.constant 0.00588235306 : f32
    %128 = vector.broadcast %cst_48 : f32 to vector<64x1xf32>
    %129 = arith.mulf %127, %128 : vector<64x1xf32>
    %cst_49 = arith.constant 9.99999997E-7 : f32
    %130 = vector.broadcast %cst_49 : f32 to vector<64x1xf32>
    %131 = arith.addf %129, %130 : vector<64x1xf32>
    %132 = math.rsqrt %131 : vector<64x1xf32>
    %133 = vector.broadcast %132 : vector<64x1xf32> to vector<64x256xf32>
    %134 = arith.mulf %124, %133 : vector<64x256xf32>
    %c0_50 = arith.constant 0 : index
    %c0_51 = arith.constant 0 : index
    %135 = vector.load %arg14[%c0_50, %c0_51] : memref<1x256xf32, #tpu.memory_space<vmem>>, vector<1x256xf32>
    %136 = vector.broadcast %135 : vector<1x256xf32> to vector<64x256xf32>
    %137 = arith.mulf %134, %136 : vector<64x256xf32>
    %c0_52 = arith.constant 0 : index
    %c0_53 = arith.constant 0 : index
    %138 = vector.load %arg15[%c0_52, %c0_53] : memref<1x256xf32, #tpu.memory_space<vmem>>, vector<1x256xf32>
    %139 = vector.broadcast %138 : vector<1x256xf32> to vector<64x256xf32>
    %140 = arith.addf %137, %139 : vector<64x256xf32>
    %141 = arith.truncf %140 : vector<64x256xf32> to vector<64x256xbf16>
    %c0_54 = arith.constant 0 : index
    %c0_55 = arith.constant 0 : index
    %142 = vector.load %arg16[%c0_54, %c0_55] : memref<256x64xbf16, #tpu.memory_space<vmem>>, vector<256x64xbf16>
    %cst_56 = arith.constant dense<0.000000e+00> : vector<64x64xf32>
    %143 = tpu.matmul %141, %142, %cst_56 {dimension_numbers = #tpu.dot_dimension_numbers<[1], [0], [0], [1], [0, 0, 1, 1], [], []>} : vector<64x256xbf16>, vector<256x64xbf16>, vector<64x64xf32> -> vector<64x64xf32>
    %c0_57 = arith.constant 0 : index
    %c0_58 = arith.constant 0 : index
    %144 = vector.load %arg17[%c0_57, %c0_58] : memref<1x64xf32, #tpu.memory_space<vmem>>, vector<1x64xf32>
    %145 = vector.broadcast %144 : vector<1x64xf32> to vector<64x64xf32>
    %146 = arith.addf %143, %145 : vector<64x64xf32>
    %147 = arith.addf %74, %146 : vector<64x64xf32>
    %c0_59 = arith.constant 0 : index
    %c0_60 = arith.constant 0 : index
    %148 = vector.load %arg18[%c0_59, %c0_60] : memref<64x64xf32, #tpu.memory_space<vmem>>, vector<64x64xf32>
    tpu.vector_store %arg18[%c0_59, %c0_60], %147 {strides = array<i32>} : memref<64x64xf32, #tpu.memory_space<vmem>>, vector<64x64xf32>,
    return
  }
  func.func @transform_0(%arg0: i32) -> (i32, i32) {
    %c0_i32 = arith.constant 0 : i32
    %c0_i32_0 = arith.constant 0 : i32
    return %arg0, %c0_i32 : i32, i32
  }
  func.func @transform_1(%arg0: i32) -> (i32, i32) {
    %c0_i32 = arith.constant 0 : i32
    %c0_i32_0 = arith.constant 0 : i32
    %c0_i32_1 = arith.constant 0 : i32
    return %c0_i32, %c0_i32_0 : i32, i32
  }
  func.func @transform_2(%arg0: i32) -> (i32, i32) {
    %c0_i32 = arith.constant 0 : i32
    %c0_i32_0 = arith.constant 0 : i32
    %c0_i32_1 = arith.constant 0 : i32
    return %c0_i32, %c0_i32_0 : i32, i32
  }
  func.func @transform_3(%arg0: i32) -> (i32, i32) {
    %c0_i32 = arith.constant 0 : i32
    %c0_i32_0 = arith.constant 0 : i32
    %c0_i32_1 = arith.constant 0 : i32
    return %c0_i32, %c0_i32_0 : i32, i32
  }
  func.func @transform_4(%arg0: i32) -> (i32, i32) {
    %c0_i32 = arith.constant 0 : i32
    %c0_i32_0 = arith.constant 0 : i32
    %c0_i32_1 = arith.constant 0 : i32
    return %c0_i32, %c0_i32_0 : i32, i32
  }
  func.func @transform_5(%arg0: i32) -> (i32, i32) {
    %c0_i32 = arith.constant 0 : i32
    %c0_i32_0 = arith.constant 0 : i32
    %c0_i32_1 = arith.constant 0 : i32
    return %c0_i32, %c0_i32_0 : i32, i32
  }
  func.func @transform_6(%arg0: i32) -> (i32, i32) {
    %c0_i32 = arith.constant 0 : i32
    %c0_i32_0 = arith.constant 0 : i32
    %c0_i32_1 = arith.constant 0 : i32
    return %c0_i32, %c0_i32_0 : i32, i32
  }
  func.func @transform_7(%arg0: i32) -> (i32, i32) {
    %c0_i32 = arith.constant 0 : i32
    %c0_i32_0 = arith.constant 0 : i32
    %c0_i32_1 = arith.constant 0 : i32
    return %c0_i32, %c0_i32_0 : i32, i32
  }
  func.func @transform_8(%arg0: i32) -> (i32, i32) {
    %c0_i32 = arith.constant 0 : i32
    %c0_i32_0 = arith.constant 0 : i32
    %c0_i32_1 = arith.constant 0 : i32
    return %c0_i32, %c0_i32_0 : i32, i32
  }
  func.func @transform_9(%arg0: i32) -> (i32, i32) {
    %c0_i32 = arith.constant 0 : i32
    %c0_i32_0 = arith.constant 0 : i32
    %c0_i32_1 = arith.constant 0 : i32
    return %c0_i32, %c0_i32_0 : i32, i32
  }
  func.func @transform_10(%arg0: i32) -> (i32, i32) {
    %c0_i32 = arith.constant 0 : i32
    %c0_i32_0 = arith.constant 0 : i32
    %c0_i32_1 = arith.constant 0 : i32
    return %c0_i32, %c0_i32_0 : i32, i32
  }
  func.func @transform_11(%arg0: i32) -> (i32, i32) {
    %c0_i32 = arith.constant 0 : i32
    %c0_i32_0 = arith.constant 0 : i32
    %c0_i32_1 = arith.constant 0 : i32
    return %c0_i32, %c0_i32_0 : i32, i32
  }
  func.func @transform_12(%arg0: i32) -> (i32, i32) {
    %c0_i32 = arith.constant 0 : i32
    %c0_i32_0 = arith.constant 0 : i32
    %c0_i32_1 = arith.constant 0 : i32
    return %c0_i32, %c0_i32_0 : i32, i32
  }
  func.func @transform_13(%arg0: i32) -> (i32, i32) {
    %c0_i32 = arith.constant 0 : i32
    %c0_i32_0 = arith.constant 0 : i32
    %c0_i32_1 = arith.constant 0 : i32
    return %c0_i32, %c0_i32_0 : i32, i32
  }
  func.func @transform_14(%arg0: i32) -> (i32, i32) {
    %c0_i32 = arith.constant 0 : i32
    %c0_i32_0 = arith.constant 0 : i32
    %c0_i32_1 = arith.constant 0 : i32
    return %c0_i32, %c0_i32_0 : i32, i32
  }
  func.func @transform_15(%arg0: i32) -> (i32, i32) {
    %c0_i32 = arith.constant 0 : i32
    %c0_i32_0 = arith.constant 0 : i32
    %c0_i32_1 = arith.constant 0 : i32
    return %c0_i32, %c0_i32_0 : i32, i32
  }
  func.func @transform_16(%arg0: i32) -> (i32, i32) {
    %c0_i32 = arith.constant 0 : i32
    %c0_i32_0 = arith.constant 0 : i32
    %c0_i32_1 = arith.constant 0 : i32
    return %c0_i32, %c0_i32_0 : i32, i32
  }
  func.func @transform_17(%arg0: i32) -> (i32, i32) {
    %c0_i32 = arith.constant 0 : i32
    %c0_i32_0 = arith.constant 0 : i32
    return %arg0, %c0_i32 : i32, i32
  }
}

</mosaic_0001>

<bundles_post_ra>
// kernel: tpu_custom_call.1
= control target key start
LH: loop header
LB: loop body
LE: loop exit
PB: predicated region body
PF: predicated region fallthrough
CT: control target
= control target key end

     0   :  { %s4621_s0 = inlined_call_operand.vmem [shape: f32[128,64], index: 0, kind: input, shape index: {}]   ;;  %s4622_s1 = inlined_call_operand.vmem [shape: f32[64,64], index: 1, kind: input, shape index: {}]   ;;  %s4623_s2 = inlined_call_operand.vmem [shape: f32[64,64], index: 2, kind: input, shape index: {}]   ;;  %s4624_s3 = inlined_call_operand.hbm [shape: f32[1,64], index: 3, kind: input, shape index: {}]   ;;  %s4625_s4 = inlined_call_operand.hbm [shape: f32[1,64], index: 4, kind: input, shape index: {}]   ;;  %s4626_s5 = inlined_call_operand.vmem [shape: bf16[64,192], index: 5, kind: input, shape index: {}]   ;;  %s4627_s6 = inlined_call_operand.vmem [shape: f32[1,192], index: 6, kind: input, shape index: {}]   ;;  %s4628_s7 = inlined_call_operand.hbm [shape: bf16[64,64], index: 7, kind: input, shape index: {}]   ;;  %s4629_s8 = inlined_call_operand.hbm [shape: f32[1,64], index: 8, kind: input, shape index: {}]   ;;  %s4630_s9 = inlined_call_operand.vmem [shape: f32[1,64], index: 9, kind: input, shape index: {}]   ;;  %s4631_s10 = inlined_call_operand.vmem [shape: f32[1,64], index: 10, kind: input, shape index: {}]   ;;  %s4632_s11 = inlined_call_operand.vmem [shape: bf16[64,512], index: 11, kind: input, shape index: {}]   ;;  %s4633_s12 = inlined_call_operand.vmem [shape: f32[1,512], index: 12, kind: input, shape index: {}]   ;;  %s4634_s13 = inlined_call_operand.vmem [shape: f32[1,256], index: 13, kind: input, shape index: {}]   ;;  %s4635_s14 = inlined_call_operand.vmem [shape: f32[1,256], index: 14, kind: input, shape index: {}]   ;;  %s4636_s15 = inlined_call_operand.vmem [shape: bf16[256,64], index: 15, kind: input, shape index: {}]   ;;  %s4637_s16 = inlined_call_operand.vmem [shape: f32[1,64], index: 16, kind: input, shape index: {}]   ;;  %s4638_s17 = inlined_call_operand.vmem [shape: f32[128,64], index: 17, kind: output, shape index: {}]  }
   0x1   :  { %4640 = sst [smem:[#allocation12_spill]] %s4621_s0 }
   0x2   :  { %4641 = sst [smem:[#allocation13_spill]] %s4622_s1 }
   0x3   :  { %22 = vsyncpa [#allocation3], 0 }
   0x4   :  { %23 = vsyncpa [#allocation5], 0 }
   0x5   :  { %24 = vsyncpa [#allocation8], 0  ;;  %s3422_s24 = smov 0  }
   0x6 LB: > { %s3322_s25 = smov [#allocation4]   ;;  %s2710_s27 = sadd.s32 4294967295, %s3320_s24   ;;  %s3320_s24 = sphi %s3422_s24, %s30_s24  }
   0x7   : > { %s453_s26 = sshll.u32 %s3322_s25, 4  ;;  %p2712_p0 = scmp.ge.s32.totalorder %s3320_s24, 1  ;;  %s454_s26 = int_to_ptr.vmem [resolvable:$true] %s453_s26 }
   0x8   : > { %p423_p1 = scmp.lt.s32.totalorder %s3320_s24, 3  ;;  %p3432_p2 = scmp.eq.s32.totalorder %s2710_s27, 0 }
   0x9   : > { %s3323_s0 = smov [#allocation2]   ;;  %s3324_s18 = smov [#allocation6]  }
   0xa   : > { %p3436_p3 = pnand %p2712_p0, %p423_p1  ;;  %s442_s30 = sshll.u32 %s3323_s0, 4  ;;  %s3442_s30 = int_to_ptr.vmem [resolvable:$true] %s442_s30 }
   0xb   : > { %s469_s19 = sshll.u32 %s3324_s18, 4  ;;  %s3325_s20 = smov [#allocation7]   ;;  %s3450_s19 = int_to_ptr.vmem [resolvable:$true] %s469_s19 }
   0xc   : > { %p2951_p4 = pneg %p3436_p3  ;;  %s3452_s21 = sshll.u32 %s3325_s20, 4  ;;  %s484_s21 = int_to_ptr.vmem [resolvable:$true] %s3452_s21 }
   0xd   : > { %s3209_s22 = scalar_lea.vmem %s454_s26, 16  ;;  %s3216_s23 = scalar_lea.vmem %s454_s26, 32 }
   0xe   : > { %p3446_p5 = pnand %p3432_p2, %p2951_p4  ;;  %p3210_p7 = scmp.ne.s32.totalorder %s454_s26, %s3209_s22 }
   0xf   : > { %p3217_p10 = scmp.lt.s32.totalorder %s454_s26, %s454_s26  ;;  %p3218_p11 = scmp.lt.s32.totalorder %s3216_s23, %s3209_s22 }
  0x10   : > { %p3200_p6 = pneg %p3446_p5 }
  0x11   : > { %p3219_p12 = por %p3218_p11, %p3217_p10 }
  0x12   : > { %p3212_p8 = pnand %p3210_p7, %p3200_p6 }
  0x14   : > { %p3213_p9 = pneg %p3212_p8 }
  0x16   : > { %p3220_p13 = pnand %p3219_p12, %p3213_p9 }
  0x18   : > { %3223 = shalt.err (!%p3220_p13)
}
  0x19   : > { %2957 = dma.hbm_to_vmem [thread:$0]  (!%p3446_p5), %s4625_s4, 16, %s454_s26, [#allocation5]  }
  0x1a   : > { %s3235_s18 = scalar_lea.vmem %s3442_s30, 16  ;;  %s3242_s20 = scalar_lea.vmem %s3442_s30, 32 }
  0x1b   : > { %p3236_p0 = scmp.ne.s32.totalorder %s3442_s30, %s3235_s18  ;;  %p3243_p7 = scmp.lt.s32.totalorder %s3442_s30, %s3442_s30 }
  0x1c   : > { %p3244_p8 = scmp.lt.s32.totalorder %s3242_s20, %s3235_s18 }
  0x1d   : > { %p3238_p1 = pnand %p3236_p0, %p3200_p6 }
  0x1e   : > { %p3245_p9 = por %p3244_p8, %p3243_p7 }
  0x1f   : > { %p3239_p4 = pneg %p3238_p1 }
  0x21   : > { %p3246_p10 = pnand %p3245_p9, %p3239_p4 }
  0x23   : > { %3249 = shalt.err (!%p3246_p10)
}
  0x24   : > { %2954 = dma.hbm_to_vmem [thread:$0]  (!%p3446_p5), %s4624_s3, 16, %s3442_s30, [#allocation3]  }
  0x25   : > { %s3261_s26 = scalar_lea.vmem %s3450_s19, 512  ;;  %p3269_p0 = scmp.lt.s32.totalorder %s3450_s19, %s3450_s19 }
  0x26   : > { %p3262_p11 = scmp.ne.s32.totalorder %s3450_s19, %s3261_s26  ;;  %p3270_p1 = scmp.lt.s32.totalorder %s3261_s26, %s3261_s26 }
  0x28   : > { %p3264_p12 = pnand %p3262_p11, %p3200_p6  ;;  %p3271_p4 = por %p3270_p1, %p3269_p0 }
  0x2a   : > { %p3265_p13 = pneg %p3264_p12 }
  0x2c   : > { %p3272_p7 = pnand %p3271_p4, %p3265_p13 }
  0x2e   : > { %3275 = shalt.err (!%p3272_p7)
}
  0x2f   : > { %s3326_s25 = smov 64   ;;  %s3327_s0 = smov 4  }
  0x30   : > { %2960 = dma.hbm_to_vmem [thread:$0]  (!%p3446_p5), %s4628_s7, 512, %s3450_s19, [#allocation5], %s3326_s25, %s3326_s25, %s3327_s0  }
  0x31   : > { %s3287_s20 = scalar_lea.vmem %s484_s21, 16  ;;  %s3294_s22 = scalar_lea.vmem %s484_s21, 32 }
  0x32   : > { %p3288_p8 = scmp.ne.s32.totalorder %s484_s21, %s3287_s20  ;;  %p3295_p11 = scmp.lt.s32.totalorder %s484_s21, %s484_s21 }
  0x33   : > { %p3296_p12 = scmp.lt.s32.totalorder %s3294_s22, %s3287_s20 }
  0x34   : > { %p3290_p9 = pnand %p3288_p8, %p3200_p6 }
  0x35   : > { %p3297_p13 = por %p3296_p12, %p3295_p11 }
  0x36   : > { %p3291_p10 = pneg %p3290_p9 }
  0x38   : > { %p3298_p0 = pnand %p3297_p13, %p3291_p10 }
  0x3a   : > { %3301 = shalt.err (!%p3298_p0)
}
  0x3b   : > { %2963 = dma.hbm_to_vmem [thread:$0]  (!%p3446_p5), %s4629_s8, 16, %s484_s21, [#allocation8]  }
  0x3c   : > { %529 = sbr.rel (%p3436_p3) target bundleno = 3098 (0xc1a), region = 88 }
  0x41   : > { %3307 = dma.done.wait (%p3432_p2), [#allocation3], 16  }
  0x42   : > { %3309 = vsyncadd (%p3432_p2), [#allocation3], 4294967280 }
  0x43   : > { %3311 = dma.done.wait (%p3432_p2), [#allocation5], 528  }
  0x44   : > { %3313 = vsyncadd (%p3432_p2), [#allocation5], 4294966768 }
  0x45   : > { %3315 = dma.done.wait (%p3432_p2), [#allocation8], 16  }
  0x46   : > { %3317 = vsyncadd (%p3432_p2), [#allocation8], 4294967280  ;;  %s2723_s29 = sshll.u32 %s2710_s27, 3  ;;  %vm632_vm0 = vcmask 523264   ;;  %s4645_s25 = sld [smem:[#allocation12_spill]]  ;;  %v3328_v63 = vmov 0  }
  0x47   : > { %p594_p3 = scmp.lt.s32.totalorder %s2723_s29, 15  ;;  %v2990_v56 = vld [vmem:[%s4626_s5 + $0x34] ss:$8 sps:$4 sm:$0xff]   ;;  %v2992_v57 = vld [vmem:[%s4626_s5 + $0x30] ss:$8 sps:$4 sm:$0xff]   ;;  %874 = vmatprep.mubr.bf16.mxu1 %v3328_v63  ;;  %s3329_s26 = smov 64  }
  0x48   : > { %850 = vmatprep.subr.bf16.mxu1 %v2990_v56  ;;  %v2993_v58 = vld [vmem:[%s4626_s5 + $0x24] ss:$8 sps:$4 sm:$0xff]   ;;  %v2995_v59 = vld [vmem:[%s4626_s5 + $0x20] ss:$8 sps:$4 sm:$0xff]   ;;  %v2996_v60 = vld [vmem:[%s4626_s5 + $0x14] ss:$8 sps:$4 sm:$0xff]  }
  0x49   : > { %s4648_s29 = smov (!%p594_p3, %s2723_s29), 15  ;;  %851 = vmatpush1.bf16.msra.mxu1 %v2992_v57  ;;  %v2998_v61 = vld [vmem:[%s4626_s5 + $0x10] ss:$8 sps:$4 sm:$0xff]   ;;  %v2999_v62 = vld [vmem:[%s4626_s5 + $0x4] ss:$8 sps:$4 sm:$0xff]   ;;  %vm923_vm1 = vcmask 1048064  }
  0x4a   : > { %s2724_s19 = sshll.u32 %s4648_s29, 3  ;;  %852 = vmatprep.subr.bf16.mxu1 %v2993_v58  ;;  %s4646_s1 = sld [smem:[#allocation13_spill]] }
  0x4c   : > { %s3524_s0 = scalar_lea.vmem %s4645_s25, %s2724_s19  ;;  %s3330_s25 = smov 32  }
  0x4d   : > { %v606_v0 = vld [vmem:[%s3524_s0] sm:$0xff]  ;;  %v608_v1 = vld [vmem:[%s3524_s0 + $0x10] sm:$0xff]  ;;  %v607_v2 = vld [vmem:[%s3524_s0 + $0x8] sm:$0xff]  ;;  %853 = vmatpush1.bf16.msra.mxu1 %v2995_v59 }
  0x4e   : > { %v633_v3 = vsel %vm632_vm0, %v606_v0, 0.0  ;;  %v639_v4 = vsel %vm632_vm0, %v608_v1, 0.0  ;;  %v609_v5 = vld [vmem:[%s3524_s0 + $0x18] sm:$0xff]  ;;  %v610_v6 = vld [vmem:[%s3524_s0 + $0x20] sm:$0xff]  ;;  %v611_v7 = vld [vmem:[%s3524_s0 + $0x28] sm:$0xff]  ;;  %v636_v8 = vsel %vm632_vm0, %v607_v2, 0.0  ;;  %854 = vmatprep.subr.bf16.mxu1 %v2996_v60 }
  0x4f   : > { %634 = vadd.xlane.f32.xlu0 %v633_v3  ;;  %640 = vadd.xlane.f32.xlu1 %v639_v4  ;;  %v642_v9 = vsel %vm632_vm0, %v609_v5, 0.0  ;;  %v645_v10 = vsel %vm632_vm0, %v610_v6, 0.0  ;;  %v648_v11 = vsel %vm632_vm0, %v611_v7, 0.0  ;;  %v612_v12 = vld [vmem:[%s3524_s0 + $0x30] sm:$0xff]  ;;  %v613_v13 = vld [vmem:[%s3524_s0 + $0x38] sm:$0xff] }
  0x50   : > { %v651_v14 = vsel %vm632_vm0, %v612_v12, 0.0  ;;  %v654_v15 = vsel %vm632_vm0, %v613_v13, 0.0 }
  0x51   : > { %855 = vmatpush1.bf16.msra.mxu1 %v2998_v61 }
  0x52   : > { %856 = vmatprep.subr.bf16.mxu1 %v2999_v62 }
  0x53   : > { %637 = vadd.xlane.f32.xlu0 %v636_v8  ;;  %643 = vadd.xlane.f32.xlu1 %v642_v9 }
  0x57   : > { %646 = vadd.xlane.f32.xlu0 %v645_v10  ;;  %649 = vadd.xlane.f32.xlu1 %v648_v11 }
  0x5b   : > { %652 = vadd.xlane.f32.xlu0 %v651_v14  ;;  %655 = vadd.xlane.f32.xlu1 %v654_v15 }
  0xd8   : > { %v635_v16 = vpop.xlane.xlu0 %634  ;;  %v641_v17 = vpop.xlane.xlu1 %640 }
  0xd9   : > { %v658_v18 = vmul.f32 0.015625, %v635_v16  ;;  %v660_v19 = vmul.f32 0.015625, %v641_v17 }
  0xdb   : > { %v3542_v20 = vsub.f32 %v606_v0, %v658_v18  ;;  %v3544_v21 = vsub.f32 %v608_v1, %v660_v19  ;;  %v3001_v0 = vld [vmem:[%s4626_s5] ss:$8 sps:$4 sm:$0xff]  }
  0xdc   : > { %v638_v22 = vpop.xlane.xlu0 %637  ;;  %v644_v23 = vpop.xlane.xlu1 %643  ;;  %857 = vmatpush1.bf16.msra.mxu1 %v3001_v0 }
  0xdd   : > { %v659_v24 = vmul.f32 0.015625, %v638_v22  ;;  %v661_v25 = vmul.f32 0.015625, %v644_v23  ;;  %v674_v26 = vmul.f32 %v3542_v20, %v3542_v20  ;;  %v676_v27 = vmul.f32 %v3544_v21, %v3544_v21 }
  0xdf   : > { %v3550_v28 = vsub.f32 %v607_v2, %v659_v24  ;;  %v3552_v29 = vsub.f32 %v609_v5, %v661_v25  ;;  %v682_v30 = vsel %vm632_vm0, %v674_v26, 0.0  ;;  %v688_v33 = vsel %vm632_vm0, %v676_v27, 0.0  ;;  %v2727_v27 = vld [vmem:[#allocation2] ss:$0 sm:$0xff] }
  0xe0   : > { %683 = vadd.xlane.f32.xlu0 %v682_v30  ;;  %v647_v31 = vpop.xlane.xlu0 %646  ;;  %v650_v32 = vpop.xlane.xlu1 %649 }
  0xe1   : > { %v662_v34 = vmul.f32 0.015625, %v647_v31  ;;  %v663_v35 = vmul.f32 0.015625, %v650_v32  ;;  %v675_v36 = vmul.f32 %v3550_v28, %v3550_v28  ;;  %v677_v37 = vmul.f32 %v3552_v29, %v3552_v29 }
  0xe3   : > { %v3560_v38 = vsub.f32 %v610_v6, %v662_v34  ;;  %v3562_v39 = vsub.f32 %v611_v7, %v663_v35  ;;  %v685_v40 = vsel %vm632_vm0, %v675_v36, 0.0  ;;  %v691_v43 = vsel %vm632_vm0, %v677_v37, 0.0  ;;  %v2728_v36 = vld [vmem:[#allocation4] ss:$0 sm:$0xff] }
  0xe4   : > { %689 = vadd.xlane.f32.xlu0 %v688_v33  ;;  %686 = vadd.xlane.f32.xlu1 %v685_v40  ;;  %v653_v41 = vpop.xlane.xlu0 %652  ;;  %v656_v42 = vpop.xlane.xlu1 %655 }
  0xe5   : > { %v664_v44 = vmul.f32 0.015625, %v653_v41  ;;  %v665_v45 = vmul.f32 0.015625, %v656_v42  ;;  %v678_v46 = vmul.f32 %v3560_v38, %v3560_v38  ;;  %v679_v47 = vmul.f32 %v3562_v39, %v3562_v39 }
  0xe7   : > { %v3570_v48 = vsub.f32 %v612_v12, %v664_v44  ;;  %v3572_v49 = vsub.f32 %v613_v13, %v665_v45  ;;  %v694_v50 = vsel %vm632_vm0, %v678_v46, 0.0  ;;  %v697_v51 = vsel %vm632_vm0, %v679_v47, 0.0 }
  0xe8   : > { %692 = vadd.xlane.f32.xlu1 %v691_v43  ;;  %695 = vadd.xlane.f32.xlu0 %v694_v50 }
  0xe9   : > { %v680_v52 = vmul.f32 %v3570_v48, %v3570_v48  ;;  %v681_v53 = vmul.f32 %v3572_v49, %v3572_v49 }
  0xeb   : > { %v700_v54 = vsel %vm632_vm0, %v680_v52, 0.0  ;;  %v703_v55 = vsel %vm632_vm0, %v681_v53, 0.0 }
  0xec   : > { %698 = vadd.xlane.f32.xlu1 %v697_v51  ;;  %701 = vadd.xlane.f32.xlu0 %v700_v54 }
  0xf0   : > { %704 = vadd.xlane.f32.xlu1 %v703_v55 }
 0x169   : > { %v684_v1 = vpop.xlane.xlu0 %683 }
 0x16a   : > { %v706_v2 = vmul.f32 0.015625, %v684_v1 }
 0x16c   : > { %v714_v3 = vadd.f32 1e-06, %v706_v2 }
 0x16d   : > { %v687_v4 = vpop.xlane.xlu1 %686  ;;  %v690_v5 = vpop.xlane.xlu0 %689 }
 0x16e   : > { %3046 = vrsqrt.f32 %v714_v3  ;;  %v707_v6 = vmul.f32 0.015625, %v687_v4  ;;  %v708_v7 = vmul.f32 0.015625, %v690_v5 }
 0x170   : > { %v715_v8 = vadd.f32 1e-06, %v707_v6  ;;  %v716_v9 = vadd.f32 1e-06, %v708_v7  ;;  %v780_v7 = vlaneseq }
 0x171   : > { %v693_v10 = vpop.xlane.xlu1 %692  ;;  %v696_v11 = vpop.xlane.xlu0 %695 }
 0x172   : > { %3048 = vrsqrt.f32 %v715_v8  ;;  %v709_v12 = vmul.f32 0.015625, %v693_v10  ;;  %v710_v14 = vmul.f32 0.015625, %v696_v11 }
 0x173   : > { %3050 = vrsqrt.f32 %v716_v9  ;;  %v3623_v9 = vshrl.u32 %v780_v7, 7 }
 0x174   : > { %v717_v13 = vadd.f32 1e-06, %v709_v12  ;;  %v718_v17 = vadd.f32 1e-06, %v710_v14 }
 0x175   : > { %v699_v15 = vpop.xlane.xlu1 %698  ;;  %v702_v19 = vpop.xlane.xlu0 %701  ;;  %v3626_v12 = vsub.s32 0, %v3623_v9 }
 0x176   : > { %3052 = vrsqrt.f32 %v717_v13  ;;  %v711_v16 = vmul.f32 0.015625, %v699_v15  ;;  %v712_v25 = vmul.f32 0.015625, %v702_v19  ;;  %v778_v13 = vld [vmem:[%s4627_s6] sm:$0x3] }
 0x178   : > { %v719_v18 = vadd.f32 1e-06, %v711_v16  ;;  %v720_v32 = vadd.f32 1e-06, %v712_v25  ;;  %v783_v16 = vrot.slane %v778_v13, %v3626_v12 }
 0x179   : > { %v705_v22 = vpop.xlane.xlu1 %704 }
 0x17a   : > { %3054 = vrsqrt.f32 %v719_v18  ;;  %v713_v23 = vmul.f32 0.015625, %v705_v22  ;;  %v3633_v18 = vsub.s32 1, %v3623_v9 }
 0x17b   : > { %v3047_v24 = vpop.eup %3046  ;;  %3056 = vrsqrt.f32 %v718_v17 }
 0x17c   : > { %v730_v26 = vmul.f32 %v3047_v24, %v3542_v20  ;;  %v721_v30 = vadd.f32 1e-06, %v713_v23  ;;  %v787_v24 = vrot.slane %v778_v13, %v3633_v18 }
 0x17e   : > { %v744_v34 = vmul.f32 %v2727_v27, %v730_v26  ;;  %3058 = vrsqrt.f32 %v721_v30 }
 0x17f   : > { %v3049_v31 = vpop.eup %3048  ;;  %3060 = vrsqrt.f32 %v720_v32 }
 0x180   : > { %v731_v33 = vmul.f32 %v3049_v31, %v3550_v28  ;;  %v3051_v35 = vpop.eup %3050  ;;  %v758_v41 = vadd.f32 %v2728_v36, %v744_v34 }
 0x181   : > { %v732_v43 = vmul.f32 %v3051_v35, %v3544_v21 }
 0x182   : > { %v745_v37 = vmul.f32 %v2727_v27, %v731_v33 }
 0x183   : > { %v3053_v40 = vpop.eup %3052  ;;  %v746_v47 = vmul.f32 %v2727_v27, %v732_v43 }
 0x184   : > { %v759_v42 = vadd.f32 %v2728_v36, %v745_v37  ;;  %v733_v44 = vmul.f32 %v3053_v40, %v3552_v29 }
 0x185   : > { %v760_v52 = vadd.f32 %v2728_v36, %v746_v47 }
 0x186   : > { %v766_v20 = vpack.c.bf16 %v759_v42, %v758_v41  ;;  %v747_v45 = vmul.f32 %v2727_v27, %v733_v44 }
 0x187   : > { %v3055_v46 = vpop.eup %3054 }
 0x188   : > { %2737 = vmatmul.mubr.msk.bf16.vlgmr.msra.gmra.mxu1 %vm632_vm0, %v766_v20  ;;  %v3057_v28 = vpop.eup %3056  ;;  %v761_v50 = vadd.f32 %v2728_v36, %v747_v45  ;;  %v735_v51 = vmul.f32 %v3055_v46, %v3562_v39 }
 0x189   : > { %884 = vmatprep.mubr.bf16.mxu1 %v3328_v63  ;;  %v734_v53 = vmul.f32 %v3057_v28, %v3560_v38 }
 0x18a   : > { %v767_v54 = vpack.c.bf16 %v761_v50, %v760_v52  ;;  %v749_v55 = vmul.f32 %v2727_v27, %v735_v51 }
 0x18b   : > { %v3059_v21 = vpop.eup %3058  ;;  %v748_v29 = vmul.f32 %v2727_v27, %v734_v53 }
 0x18c   : > { %v3061_v56 = vpop.eup %3060  ;;  %v763_v57 = vadd.f32 %v2728_v36, %v749_v55  ;;  %v737_v58 = vmul.f32 %v3059_v21, %v3572_v49  ;;  %v628_v21 = vld [vmem:[%s4623_s2 + $0x30] sm:$0xff] }
 0x18d   : > { %v762_v59 = vadd.f32 %v2728_v36, %v748_v29  ;;  %v736_v60 = vmul.f32 %v3061_v56, %v3570_v48  ;;  %v629_v29 = vld [vmem:[%s4623_s2 + $0x38] sm:$0xff] }
 0x18e   : > { %v751_v39 = vmul.f32 %v2727_v27, %v737_v58 }
 0x18f   : > { %v768_v61 = vpack.c.bf16 %v763_v57, %v762_v59  ;;  %v750_v38 = vmul.f32 %v2727_v27, %v736_v60 }
 0x190   : > { %2738 = vmatmul.mubr.msk.bf16.gmra.mxu1 %vm632_vm0, %v767_v54  ;;  %v765_v62 = vadd.f32 %v2728_v36, %v751_v39 }
 0x191   : > { %894 = vmatprep.mubr.bf16.mxu1 %v3328_v63  ;;  %v764_v0 = vadd.f32 %v2728_v36, %v750_v38  ;;  %v626_v38 = vld [vmem:[%s4623_s2 + $0x20] sm:$0xff] }
 0x193   : > { %v769_v1 = vpack.c.bf16 %v765_v62, %v764_v0 }
 0x198   : > { %2739 = vmatmul.mubr.msk.bf16.gmra.mxu1 %vm632_vm0, %v768_v61 }
 0x199   : > { %904 = vmatprep.mubr.bf16.mxu1 %v3328_v63 }
 0x1a0   : > { %2740 = vmatmul.mubr.msk.bf16.gmra.mxu1 %vm632_vm0, %v769_v1 }
 0x248   : > { %v876_v2 = vpop.f32.mrf.mxu1 }
 0x249   : > { %v3650_v36 = vadd.f32 %v876_v2, %v783_v16  ;;  %v627_v2 = vld [vmem:[%s4623_s2 + $0x28] sm:$0xff] }
 0x24a   : > { %v878_v3 = vpop.f32.mrf.mxu1 }
 0x24b   : > { %v879_v20 = vadd.f32 %v878_v3, %v787_v24 }
 0x24c   : > { %v880_v4 = vpop.f32.mrf.mxu1 }
 0x24d   : > { %v3664_v47 = vadd.f32 %v880_v4, %v783_v16 }
 0x24e   : > { %v882_v5 = vpop.f32.mrf.mxu1 }
 0x24f   : > { %v883_v43 = vadd.f32 %v882_v5, %v787_v24  ;;  %v624_v5 = vld [vmem:[%s4623_s2 + $0x10] sm:$0xff] }
 0x250   : > { %v886_v49 = vpop.f32.mrf.mxu1 }
 0x251   : > { %v3640_v25 = vadd.f32 %v886_v49, %v783_v16  ;;  %v1052_v46 = vpack.c.bf16 %v883_v43, %v879_v20 }
 0x252   : > { %v888_v6 = vpop.f32.mrf.mxu1 }
 0x253   : > { %v889_v41 = vadd.f32 %v888_v6, %v787_v24 }
 0x254   : > { %v890_v48 = vpop.f32.mrf.mxu1 }
 0x255   : > { %v3660_v45 = vadd.f32 %v890_v48, %v783_v16  ;;  %v625_v48 = vld [vmem:[%s4623_s2 + $0x18] sm:$0xff] }
 0x256   : > { %v892_v8 = vpop.f32.mrf.mxu1 }
 0x257   : > { %v893_v37 = vadd.f32 %v892_v8, %v787_v24 }
 0x258   : > { %v896_v10 = vpop.f32.mrf.mxu1 }
 0x259   : > { %v3648_v33 = vadd.f32 %v896_v10, %v783_v16  ;;  %v1053_v44 = vpack.c.bf16 %v893_v37, %v889_v41 }
 0x25a   : > { %v898_v11 = vpop.f32.mrf.mxu1 }
 0x25b   : > { %v899_v34 = vadd.f32 %v898_v11, %v787_v24  ;;  %v622_v11 = vld [vmem:[%s4623_s2] sm:$0xff] }
 0x25c   : > { %v900_v14 = vpop.f32.mrf.mxu1 }
 0x25d   : > { %v3656_v42 = vadd.f32 %v900_v14, %v783_v16  ;;  %v623_v14 = vld [vmem:[%s4623_s2 + $0x8] sm:$0xff] }
 0x25e   : > { %v902_v15 = vpop.f32.mrf.mxu1 }
 0x25f   : > { %v903_v30 = vadd.f32 %v902_v15, %v787_v24  ;;  %v3756_v15 = vmul.f32 0.125, %v3650_v36 }
 0x260   : > { %v906_v17 = vpop.f32.mrf.mxu1 }
 0x261   : > { %v3635_v19 = vadd.f32 %v906_v17, %v783_v16  ;;  %v1054_v40 = vpack.c.bf16 %v903_v30, %v899_v34  ;;  %v3765_v17 = vmul.f32 0.125, %v3640_v25 }
 0x262   : > { %v908_v22 = vpop.f32.mrf.mxu1 }
 0x263   : > { %992 = vrot.lane.b32.xlu0 %v3635_v19, %s3329_s26  ;;  %v909_v31 = vadd.f32 %v908_v22, %v787_v24  ;;  %v3772_v22 = vmul.f32 0.125, %v3660_v45 }
 0x264   : > { %v910_v23 = vpop.f32.mrf.mxu1 }
 0x265   : > { %v3642_v26 = vadd.f32 %v910_v23, %v783_v16  ;;  %v3762_v16 = vmul.f32 0.125, %v3664_v47  ;;  %v3775_v23 = vmul.f32 0.125, %v3648_v33 }
 0x266   : > { %v912_v27 = vpop.f32.mrf.mxu1 }
 0x267   : > { %v913_v32 = vadd.f32 %v912_v27, %v787_v24  ;;  %994 = vrot.lane.b32.xlu1 %v3642_v26, %s3329_s26  ;;  %984 = vrot.lane.b32.xlu0 %v3640_v25, %s3329_s26  ;;  %v3782_v24 = vmul.f32 0.125, %v3656_v42  ;;  %v3785_v27 = vmul.f32 0.125, %v3635_v19  ;;  %v3792_v30 = vmul.f32 0.125, %v3642_v26 }
 0x269   : > { %v1055_v35 = vpack.c.bf16 %v913_v32, %v909_v31  ;;  %v3797_v31 = vld [vmem:[%s4646_s1 + $0x30] sm:$0xff]  ;;  %v3806_v32 = vld [vmem:[%s4646_s1 + $0x38] sm:$0xff] }
 0x26b   : > { %988 = vrot.lane.b32.xlu1 %v3648_v33, %s3329_s26  ;;  %2899 = vmatprep.subr.bf16.mxu0 %v1055_v35 }
 0x26c   : > { %980 = vrot.lane.b32.xlu0 %v3650_v36, %s3329_s26  ;;  %2900 = vmatpush3.bf16.msra.mxu0 %v1055_v35 }
 0x26d   : > { %2901 = vmatprep.subr.bf16.mxu0 %v1054_v40 }
 0x26f   : > { %990 = vrot.lane.b32.xlu1 %v3656_v42, %s3329_s26 }
 0x270   : > { %2902 = vmatpush3.bf16.msra.mxu0 %v1054_v40 }
 0x271   : > { %2903 = vmatprep.subr.bf16.mxu0 %v1053_v44 }
 0x273   : > { %986 = vrot.lane.b32.xlu1 %v3660_v45, %s3329_s26 }
 0x274   : > { %2904 = vmatpush3.bf16.msra.mxu0 %v1053_v44 }
 0x275   : > { %2905 = vmatprep.subr.bf16.mxu0 %v1052_v46 }
 0x277   : > { %982 = vrot.lane.b32.xlu1 %v3664_v47, %s3329_s26 }
 0x278   : > { %2906 = vmatpush3.bf16.msra.mxu0 %v1052_v46  ;;  %v3824_v46 = vld [vmem:[%s4646_s1 + $0x20] sm:$0xff] }
 0x2d5   : > { %v3668_v28 = vpop.permute.xlu0 %992 }
 0x2d6   : > { %1022 = vrot.lane.b32.xlu0 %v3668_v28, %s3329_s26 }
 0x2d9   : > { %v3672_v50 = vpop.permute.xlu1 %994  ;;  %v3680_v52 = vpop.permute.xlu0 %984 }
 0x2da   : > { %1025 = vrot.lane.b32.xlu1 %v3672_v50, %s3329_s26 }
 0x2dd   : > { %v3676_v51 = vpop.permute.xlu1 %988 }
 0x2de   : > { %1016 = vrot.lane.b32.xlu0 %v3676_v51, %s3329_s26  ;;  %v3688_v54 = vpop.permute.xlu0 %980 }
 0x2e1   : > { %v3682_v53 = vpop.permute.xlu1 %990 }
 0x2e2   : > { %1019 = vrot.lane.b32.xlu1 %v3682_v53, %s3329_s26  ;;  %1010 = vrot.lane.b32.xlu0 %v3680_v52, %s3329_s26 }
 0x2e5   : > { %v3690_v55 = vpop.permute.xlu1 %986 }
 0x2e6   : > { %1013 = vrot.lane.b32.xlu1 %v3690_v55, %s3329_s26  ;;  %1004 = vrot.lane.b32.xlu0 %v3688_v54, %s3329_s26 }
 0x2e9   : > { %v3699_v56 = vpop.permute.xlu1 %982 }
 0x2ea   : > { %1007 = vrot.lane.b32.xlu1 %v3699_v56, %s3329_s26  ;;  %1084 = vrot.lane.b32.xlu0 %v628_v21, %s3330_s25 }
 0x2ee   : > { %1086 = vrot.lane.b32.xlu1 %v629_v29, %s3330_s25 }
 0x348   : > { %v1023_v57 = vpop.permute.xlu0 %1022 }
 0x349   : > { %v1024_v58 = vsel %vm923_vm1, %v1023_v57, %v3668_v28 }
 0x34a   : > { %1040 = vrot.lane.b32.xlu0 %v1024_v58, %s3329_s26 }
 0x34c   : > { %v1026_v59 = vpop.permute.xlu1 %1025 }
 0x34d   : > { %v1027_v60 = vsel %vm923_vm1, %v1026_v59, %v3672_v50 }
 0x34e   : > { %1042 = vrot.lane.b32.xlu1 %v1027_v60, %s3329_s26 }
 0x350   : > { %v1017_v61 = vpop.permute.xlu0 %1016 }
 0x351   : > { %v1018_v39 = vsel %vm923_vm1, %v1017_v61, %v3676_v51 }
 0x352   : > { %1036 = vrot.lane.b32.xlu0 %v1018_v39, %s3329_s26 }
 0x354   : > { %v1020_v62 = vpop.permute.xlu1 %1019  ;;  %v1011_v1 = vpop.permute.xlu0 %1010 }
 0x355   : > { %v1021_v0 = vsel %vm923_vm1, %v1020_v62, %v3682_v53  ;;  %v1012_v3 = vsel %vm923_vm1, %v1011_v1, %v3680_v52  ;;  %v3863_v1 = vld [vmem:[%s4646_s1 + $0x18] sm:$0xff] }
 0x356   : > { %1038 = vrot.lane.b32.xlu1 %v1021_v0, %s3329_s26  ;;  %1080 = vrot.lane.b32.xlu0 %v626_v38, %s3330_s25 }
 0x358   : > { %v1014_v4 = vpop.permute.xlu1 %1013  ;;  %v1005_v6 = vpop.permute.xlu0 %1004 }
 0x359   : > { %v1015_v49 = vsel %vm923_vm1, %v1014_v4, %v3690_v55  ;;  %v1006_v8 = vsel %vm923_vm1, %v1005_v6, %v3688_v54 }
 0x35a   : > { %1082 = vrot.lane.b32.xlu1 %v627_v2, %s3330_s25  ;;  %1032 = vrot.lane.b32.xlu0 %v1012_v3, %s3329_s26 }
 0x35c   : > { %v1008_v10 = vpop.permute.xlu1 %1007  ;;  %v3810_v34 = vpop.permute.xlu0 %1084 }
 0x35d   : > { %v1009_v13 = vsel %vm923_vm1, %v1008_v10, %v3699_v56 }
 0x35e   : > { %1034 = vrot.lane.b32.xlu1 %v1015_v49, %s3329_s26  ;;  %1076 = vrot.lane.b32.xlu0 %v624_v5, %s3330_s25  ;;  %v3876_v5 = vld [vmem:[%s4646_s1] sm:$0xff] }
 0x360   : > { %v3812_v35 = vpop.permute.xlu1 %1086 }
 0x362   : > { %1078 = vrot.lane.b32.xlu1 %v625_v48, %s3330_s25  ;;  %1028 = vrot.lane.b32.xlu0 %v1006_v8, %s3329_s26  ;;  %v3889_v8 = vld [vmem:[%s4646_s1 + $0x8] sm:$0xff] }
 0x366   : > { %1030 = vrot.lane.b32.xlu1 %v1009_v13, %s3329_s26  ;;  %1072 = vrot.lane.b32.xlu0 %v622_v11, %s3330_s25 }
 0x36a   : > { %1074 = vrot.lane.b32.xlu1 %v623_v14, %s3330_s25  ;;  %924 = vrot.lane.b32.xlu0 %v3756_v15, %s3329_s26 }
 0x36e   : > { %927 = vrot.lane.b32.xlu1 %v3762_v16, %s3329_s26  ;;  %930 = vrot.lane.b32.xlu0 %v3765_v17, %s3329_s26 }
 0x372   : > { %933 = vrot.lane.b32.xlu1 %v3772_v22, %s3329_s26  ;;  %936 = vrot.lane.b32.xlu0 %v3775_v23, %s3329_s26 }
 0x376   : > { %939 = vrot.lane.b32.xlu1 %v3782_v24, %s3329_s26  ;;  %942 = vrot.lane.b32.xlu0 %v3785_v27, %s3329_s26 }
 0x37a   : > { %945 = vrot.lane.b32.xlu1 %v3792_v30, %s3329_s26  ;;  %1168 = vrot.lane.b32.xlu0 %v3797_v31, %s3329_s26 }
 0x37e   : > { %1170 = vrot.lane.b32.xlu1 %v3806_v32, %s3329_s26 }
 0x3bc   : > { %v1041_v37 = vpop.permute.xlu0 %1040 }
 0x3bd   : > { %v1050_v40 = vsel %vm923_vm1, %v1041_v37, %v3668_v28  ;;  %v3832_v28 = vld [vmem:[%s4646_s1 + $0x28] sm:$0xff] }
 0x3be   : > { %v1194_v41 = vmul.f32 %v3810_v34, %v1050_v40 }
 0x3c0   : > { %v1043_v43 = vpop.permute.xlu1 %1042  ;;  %1216 = vrot.lane.b32.xlu0 %v1194_v41, %s3330_s25 }
 0x3c1   : > { %v1051_v44 = vsel %vm923_vm1, %v1043_v43, %v3672_v50 }
 0x3c2   : > { %v1195_v20 = vmul.f32 %v3812_v35, %v1051_v44 }
 0x3c4   : > { %1218 = vrot.lane.b32.xlu1 %v1195_v20, %s3330_s25  ;;  %v1037_v21 = vpop.permute.xlu0 %1036  ;;  %1164 = vrot.lane.b32.xlu0 %v3824_v46, %s3329_s26 }
 0x3c5   : > { %v1048_v50 = vsel %vm923_vm1, %v1037_v21, %v3676_v51  ;;  %v3850_v51 = vld [vmem:[%s4646_s1 + $0x10] sm:$0xff] }
 0x3c8   : > { %v1039_v29 = vpop.permute.xlu1 %1038  ;;  %1166 = vrot.lane.b32.xlu1 %v3832_v28, %s3329_s26  ;;  %v3838_v57 = vpop.permute.xlu0 %1080 }
 0x3c9   : > { %v1192_v58 = vmul.f32 %v3838_v57, %v1048_v50  ;;  %v1049_v59 = vsel %vm923_vm1, %v1039_v29, %v3682_v53 }
 0x3cb   : > { %1212 = vrot.lane.b32.xlu0 %v1192_v58, %s3330_s25 }
 0x3cc   : > { %v3844_v60 = vpop.permute.xlu1 %1082  ;;  %v1033_v61 = vpop.permute.xlu0 %1032 }
 0x3cd   : > { %v1193_v39 = vmul.f32 %v3844_v60, %v1049_v59  ;;  %v1046_v38 = vsel %vm923_vm1, %v1033_v61, %v3680_v52 }
 0x3cf   : > { %1214 = vrot.lane.b32.xlu1 %v1193_v39, %s3330_s25  ;;  %1160 = vrot.lane.b32.xlu0 %v3850_v51, %s3329_s26 }
 0x3d0   : > { %v1035_v62 = vpop.permute.xlu1 %1034  ;;  %v3857_v53 = vpop.permute.xlu0 %1076 }
 0x3d1   : > { %v1190_v0 = vmul.f32 %v3857_v53, %v1046_v38  ;;  %v1047_v2 = vsel %vm923_vm1, %v1035_v62, %v3690_v55 }
 0x3d3   : > { %1162 = vrot.lane.b32.xlu1 %v3863_v1, %s3329_s26  ;;  %1208 = vrot.lane.b32.xlu0 %v1190_v0, %s3330_s25 }
 0x3d4   : > { %v3870_v3 = vpop.permute.xlu1 %1078  ;;  %v1029_v52 = vpop.permute.xlu0 %1028 }
 0x3d5   : > { %v1191_v4 = vmul.f32 %v3870_v3, %v1047_v2  ;;  %v1044_v49 = vsel %vm923_vm1, %v1029_v52, %v3688_v54 }
 0x3d7   : > { %1210 = vrot.lane.b32.xlu1 %v1191_v4, %s3330_s25  ;;  %1156 = vrot.lane.b32.xlu0 %v3876_v5, %s3329_s26 }
 0x3d8   : > { %v1031_v6 = vpop.permute.xlu1 %1030  ;;  %v3883_v55 = vpop.permute.xlu0 %1072 }
 0x3d9   : > { %v1188_v48 = vmul.f32 %v3883_v55, %v1044_v49  ;;  %v1045_v10 = vsel %vm923_vm1, %v1031_v6, %v3699_v56 }
 0x3db   : > { %1158 = vrot.lane.b32.xlu1 %v3889_v8, %s3329_s26  ;;  %1204 = vrot.lane.b32.xlu0 %v1188_v48, %s3330_s25 }
 0x3dc   : > { %v3896_v11 = vpop.permute.xlu1 %1074  ;;  %v925_v54 = vpop.permute.xlu0 %924 }
 0x3dd   : > { %v1189_v13 = vmul.f32 %v3896_v11, %v1045_v10  ;;  %v926_v14 = vsel %vm923_vm1, %v925_v54, %v3756_v15 }
 0x3df   : > { %1206 = vrot.lane.b32.xlu1 %v1189_v13, %s3330_s25  ;;  %948 = vrot.lane.b32.xlu0 %v926_v14, %s3329_s26  ;;  %s3331_s25 = smov 96  }
 0x3e0   : > { %v928_v37 = vpop.permute.xlu1 %927  ;;  %v931_v40 = vpop.permute.xlu0 %930 }
 0x3e1   : > { %v929_v41 = vsel %vm923_vm1, %v928_v37, %v3762_v16  ;;  %v932_v56 = vsel %vm923_vm1, %v931_v40, %v3765_v17 }
 0x3e3   : > { %950 = vrot.lane.b32.xlu1 %v929_v41, %s3329_s26  ;;  %952 = vrot.lane.b32.xlu0 %v932_v56, %s3329_s26 }
 0x3e4   : > { %v934_v43 = vpop.permute.xlu1 %933  ;;  %v937_v44 = vpop.permute.xlu0 %936 }
 0x3e5   : > { %v935_v20 = vsel %vm923_vm1, %v934_v43, %v3772_v22  ;;  %v938_v21 = vsel %vm923_vm1, %v937_v44, %v3775_v23 }
 0x3e7   : > { %954 = vrot.lane.b32.xlu1 %v935_v20, %s3329_s26  ;;  %956 = vrot.lane.b32.xlu0 %v938_v21, %s3329_s26 }
 0x3e8   : > { %v940_v50 = vpop.permute.xlu1 %939  ;;  %v943_v29 = vpop.permute.xlu0 %942 }
 0x3e9   : > { %v941_v58 = vsel %vm923_vm1, %v940_v50, %v3782_v24  ;;  %v944_v59 = vsel %vm923_vm1, %v943_v29, %v3785_v27 }
 0x3eb   : > { %958 = vrot.lane.b32.xlu1 %v941_v58, %s3329_s26  ;;  %960 = vrot.lane.b32.xlu0 %v944_v59, %s3329_s26 }
 0x3ec   : > { %v946_v61 = vpop.permute.xlu1 %945  ;;  %v1169_v38 = vpop.permute.xlu0 %1168 }
 0x3ed   : > { %v947_v39 = vsel %vm923_vm1, %v946_v61, %v3792_v30  ;;  %v1186_v2 = vmul.f32 %v1169_v38, %v3635_v19 }
 0x3ef   : > { %962 = vrot.lane.b32.xlu1 %v947_v39, %s3329_s26 }
 0x3f0   : > { %v1171_v62 = vpop.permute.xlu1 %1170 }
 0x3f1   : > { %v1187_v52 = vmul.f32 %v1171_v62, %v3642_v26 }
 0x432   : > { %v1217_v0 = vpop.permute.xlu0 %1216 }
 0x433   : > { %v1234_v49 = vadd.f32 %v1217_v0, %v1186_v2 }
 0x436   : > { %v1219_v4 = vpop.permute.xlu1 %1218  ;;  %v1165_v10 = vpop.permute.xlu0 %1164 }
 0x437   : > { %v1235_v6 = vadd.f32 %v1219_v4, %v1187_v52  ;;  %v1184_v14 = vmul.f32 %v1165_v10, %v3648_v33 }
 0x439   : > { %v1239_v48 = vpack.c.bf16 %v1235_v6, %v1234_v49 }
 0x43a   : > { %v1167_v54 = vpop.permute.xlu1 %1166 }
 0x43b   : > { %1250 = vrot.lane.b32.xlu0 %v1239_v48, %s3329_s26  ;;  %v1185_v37 = vmul.f32 %v1167_v54, %v3656_v42 }
 0x43d   : > { %v1213_v13 = vpop.permute.xlu0 %1212 }
 0x43e   : > { %v1232_v56 = vadd.f32 %v1213_v13, %v1184_v14 }
 0x441   : > { %v1215_v40 = vpop.permute.xlu1 %1214  ;;  %v1161_v41 = vpop.permute.xlu0 %1160 }
 0x442   : > { %v1233_v43 = vadd.f32 %v1215_v40, %v1185_v37  ;;  %v1182_v20 = vmul.f32 %v1161_v41, %v3640_v25 }
 0x444   : > { %v1238_v19 = vpack.c.bf16 %v1233_v43, %v1232_v56 }
 0x445   : > { %v1163_v44 = vpop.permute.xlu1 %1162  ;;  %v1209_v26 = vpop.permute.xlu0 %1208 }
 0x446   : > { %1248 = vrot.lane.b32.xlu1 %v1238_v19, %s3329_s26  ;;  %v1183_v21 = vmul.f32 %v1163_v44, %v3660_v45  ;;  %v1230_v58 = vadd.f32 %v1209_v26, %v1182_v20 }
 0x449   : > { %v1211_v50 = vpop.permute.xlu1 %1210  ;;  %v1157_v29 = vpop.permute.xlu0 %1156 }
 0x44a   : > { %v1231_v59 = vadd.f32 %v1211_v50, %v1183_v21  ;;  %v1180_v39 = vmul.f32 %v1157_v29, %v3650_v36 }
 0x44c   : > { %v1237_v33 = vpack.c.bf16 %v1231_v59, %v1230_v58  ;;  %v1056_v59 = vmul.f32 %v3756_v15, %v3876_v5  ;;  %v1061_v5 = vmul.f32 %v3782_v24, %v3832_v28 }
 0x44d   : > { %v1159_v61 = vpop.permute.xlu1 %1158  ;;  %v1205_v42 = vpop.permute.xlu0 %1204 }
 0x44e   : > { %1246 = vrot.lane.b32.xlu0 %v1237_v33, %s3329_s26  ;;  %v1181_v38 = vmul.f32 %v1159_v61, %v3664_v47  ;;  %v1228_v2 = vadd.f32 %v1205_v42, %v1180_v39  ;;  %v1057_v61 = vmul.f32 %v3762_v16, %v3889_v8 }
 0x451   : > { %v1207_v62 = vpop.permute.xlu1 %1206  ;;  %v949_v0 = vpop.permute.xlu0 %948 }
 0x452   : > { %v1229_v52 = vadd.f32 %v1207_v62, %v1181_v38  ;;  %v964_v25 = vsel %vm923_vm1, %v949_v0, %v3756_v15  ;;  %v1058_v62 = vmul.f32 %v3765_v17, %v3850_v51  ;;  %v1060_v15 = vmul.f32 %v3775_v23, %v3824_v46 }
 0x453   : > { %v1096_v45 = vmul.f32 %v3883_v55, %v964_v25 }
 0x454   : > { %v1236_v4 = vpack.c.bf16 %v1229_v52, %v1228_v2  ;;  %v1059_v2 = vmul.f32 %v3772_v22, %v3863_v1 }
 0x455   : > { %v951_v49 = vpop.permute.xlu1 %950  ;;  %1112 = vrot.lane.b32.xlu0 %v1096_v45, %s3331_s25  ;;  %v953_v6 = vpop.permute.xlu0 %952 }
 0x456   : > { %v965_v48 = vsel %vm923_vm1, %v951_v49, %v3762_v16  ;;  %v966_v36 = vsel %vm923_vm1, %v953_v6, %v3765_v17  ;;  %1244 = vrot.lane.b32.xlu1 %v1236_v4, %s3329_s26  ;;  %v1063_v6 = vmul.f32 %v3792_v30, %v3806_v32  ;;  %s4592_s26 = scalar_lea.vmem %s4638_s17, %s2724_s19 }
 0x457   : > { %v1097_v47 = vmul.f32 %v3896_v11, %v965_v48  ;;  %v1098_v10 = vmul.f32 %v3857_v53, %v966_v36 }
 0x459   : > { %v955_v54 = vpop.permute.xlu1 %954  ;;  %1116 = vrot.lane.b32.xlu0 %v1098_v10, %s3331_s25  ;;  %v957_v55 = vpop.permute.xlu0 %956 }
 0x45a   : > { %v967_v13 = vsel %vm923_vm1, %v955_v54, %v3772_v22  ;;  %v968_v14 = vsel %vm923_vm1, %v957_v55, %v3775_v23  ;;  %1114 = vrot.lane.b32.xlu1 %v1097_v47, %s3331_s25  ;;  %v1062_v22 = vmul.f32 %v3785_v27, %v3797_v31 }
 0x45b   : > { %v1099_v37 = vmul.f32 %v3870_v3, %v967_v13  ;;  %v1100_v40 = vmul.f32 %v3838_v57, %v968_v14 }
 0x45d   : > { %v959_v41 = vpop.permute.xlu1 %958  ;;  %1120 = vrot.lane.b32.xlu0 %v1100_v40, %s3331_s25  ;;  %v961_v56 = vpop.permute.xlu0 %960 }
 0x45e   : > { %v969_v53 = vsel %vm923_vm1, %v959_v41, %v3782_v24  ;;  %v970_v11 = vsel %vm923_vm1, %v961_v56, %v3785_v27  ;;  %1118 = vrot.lane.b32.xlu1 %v1099_v37, %s3331_s25 }
 0x45f   : > { %v1101_v43 = vmul.f32 %v3844_v60, %v969_v53  ;;  %v1102_v19 = vmul.f32 %v3810_v34, %v970_v11 }
 0x461   : > { %v963_v44 = vpop.permute.xlu1 %962  ;;  %1124 = vrot.lane.b32.xlu0 %v1102_v19, %s3331_s25 }
 0x462   : > { %v971_v3 = vsel %vm923_vm1, %v963_v44, %v3792_v30  ;;  %1122 = vrot.lane.b32.xlu1 %v1101_v43, %s3331_s25 }
 0x463   : > { %v1103_v57 = vmul.f32 %v3812_v35, %v971_v3 }
 0x466   : > { %1126 = vrot.lane.b32.xlu1 %v1103_v57, %s3331_s25 }
 0x4ad   : > { %v1251_v26 = vpop.permute.xlu0 %1250 }
 0x4ae   : > { %v1274_v20 = vsel %vm632_vm0, %v1251_v26, 0  ;;  %2931 = vmatprep.subr.msk.bf16.mxu1 %vm632_vm0, %v1251_v26 }
 0x4af   : > { %2884 = vmatpush3.bf16.xpose.msra.mxu1 %v1274_v20 }
 0x4b8   : > { %v1249_v21 = vpop.permute.xlu1 %1248 }
 0x4b9   : > { %v1271_v60 = vsel %vm632_vm0, %v1249_v21, 0  ;;  %2932 = vmatprep.subr.msk.bf16.mxu1 %vm632_vm0, %v1249_v21 }
 0x4ba   : > { %2886 = vmatpush3.bf16.xpose.msra.mxu1 %v1271_v60 }
 0x4c0   : > { %v1247_v34 = vpop.permute.xlu0 %1246 }
 0x4c1   : > { %v1268_v50 = vsel %vm632_vm0, %v1247_v34, 0  ;;  %2933 = vmatprep.subr.msk.bf16.mxu1 %vm632_vm0, %v1247_v34 }
 0x4c2   : > { %2888 = vmatpush3.bf16.xpose.msra.mxu1 %v1268_v50 }
 0x4c7   : > { %v1113_v35 = vpop.permute.xlu0 %1112 }
 0x4c8   : > { %v1245_v29 = vpop.permute.xlu1 %1244  ;;  %v1136_v39 = vadd.f32 %v1113_v35, %v1056_v59 }
 0x4c9   : > { %v1265_v58 = vsel %vm632_vm0, %v1245_v29, 0  ;;  %2934 = vmatprep.subr.msk.bf16.mxu1 %vm632_vm0, %v1245_v29 }
 0x4ca   : > { %2890 = vmatpush3.bf16.xpose.msra.mxu1 %v1265_v58 }
 0x4cb   : > { %v1117_v33 = vpop.permute.xlu0 %1116 }
 0x4cc   : > { %v1115_v42 = vpop.permute.xlu1 %1114  ;;  %v1138_v45 = vadd.f32 %v1117_v33, %v1058_v62 }
 0x4cd   : > { %v1137_v38 = vadd.f32 %v1115_v42, %v1057_v61 }
 0x4cf   : > { %v1144_v0 = vpack.c.bf16 %v1137_v38, %v1136_v39  ;;  %v1121_v52 = vpop.permute.xlu0 %1120 }
 0x4d0   : > { %v1119_v25 = vpop.permute.xlu1 %1118  ;;  %v1140_v49 = vadd.f32 %v1121_v52, %v1060_v15 }
 0x4d1   : > { %v1139_v4 = vadd.f32 %v1119_v25, %v1059_v2  ;;  %2891 = vmatprep.mubr.msk.bf16.mxu1 %vm632_vm0, %v1144_v0 }
 0x4d3   : > { %v1145_v16 = vpack.c.bf16 %v1139_v4, %v1138_v45  ;;  %v1125_v51 = vpop.permute.xlu0 %1124 }
 0x4d4   : > { %v1123_v8 = vpop.permute.xlu1 %1122  ;;  %v1142_v36 = vadd.f32 %v1125_v51, %v1062_v22 }
 0x4d5   : > { %v1141_v17 = vadd.f32 %v1123_v8, %v1061_v5  ;;  %2892 = vmatmul.mubr.msk.bf16.vlgmr.msra.gmra.mxu1 %vm632_vm0, %v1145_v16 }
 0x4d7   : > { %v1146_v1 = vpack.c.bf16 %v1141_v17, %v1140_v49 }
 0x4d8   : > { %v1127_v48 = vpop.permute.xlu1 %1126 }
 0x4d9   : > { %v1143_v23 = vadd.f32 %v1127_v48, %v1063_v6  ;;  %2895 = vmatprep.mubr.msk.bf16.mxu1 %vm632_vm0, %v1146_v1 }
 0x4db   : > { %v1147_v46 = vpack.c.bf16 %v1143_v23, %v1142_v36 }
 0x4dd   : > { %2896 = vmatmul.mubr.msk.bf16.gmra.mxu1 %vm632_vm0, %v1147_v46 }
 0x595   : > { %v2893_v24 = vpop.f32.mrf.mxu1 }
 0x596   : > { %v1347_v27 = vsel %vm632_vm0, %v2893_v24, -inf }
 0x597   : > { %v1310_v28 = vpop.f32.mrf.mxu1 }
 0x598   : > { %v1341_v47 = vsel %vm632_vm0, %v1310_v28, -inf }
 0x599   : > { %1342 = vmax.xlane.f32.xlu0 %v1341_v47  ;;  %v2894_v10 = vpop.f32.mrf.mxu1  ;;  %v3003_v47 = vld [vmem:[#allocation6 + $0x10] sm:$0xff]  }
 0x59a   : > { %v1350_v55 = vsel %vm632_vm0, %v2894_v10, -inf }
 0x59b   : > { %v1313_v54 = vpop.f32.mrf.mxu1 }
 0x59c   : > { %v1344_v31 = vsel %vm632_vm0, %v1313_v54, -inf }
 0x59d   : > { %1348 = vmax.xlane.f32.xlu0 %v1347_v27  ;;  %1345 = vmax.xlane.f32.xlu1 %v1344_v31  ;;  %v2897_v30 = vpop.f32.mrf.mxu1 }
 0x59e   : > { %v1359_v41 = vsel %vm632_vm0, %v2897_v30, -inf }
 0x59f   : > { %v1326_v32 = vpop.f32.mrf.mxu1 }
 0x5a0   : > { %v1353_v37 = vsel %vm632_vm0, %v1326_v32, -inf }
 0x5a1   : > { %1351 = vmax.xlane.f32.xlu0 %v1350_v55  ;;  %v2898_v13 = vpop.f32.mrf.mxu1 }
 0x5a2   : > { %v1362_v56 = vsel %vm632_vm0, %v2898_v13, -inf }
 0x5a3   : > { %v1329_v14 = vpop.f32.mrf.mxu1 }
 0x5a4   : > { %v1356_v40 = vsel %vm632_vm0, %v1329_v14, -inf }
 0x5a5   : > { %1354 = vmax.xlane.f32.xlu0 %v1353_v37  ;;  %1357 = vmax.xlane.f32.xlu1 %v1356_v40 }
 0x5a9   : > { %1360 = vmax.xlane.f32.xlu0 %v1359_v41  ;;  %1363 = vmax.xlane.f32.xlu1 %v1362_v56 }
 0x622   : > { %v1343_v53 = vpop.xlane.xlu0 %1342 }
 0x623   : > { %v1365_v11 = vsub.f32 %v1310_v28, %v1343_v53  ;;  %v3002_v28 = vld [vmem:[#allocation6 + $0x18] sm:$0xff]  }
 0x624   : > { %2915 = vmatprep.subr.bf16.mxu1 %v3002_v28 }
 0x625   : > { %v1373_v43 = vmul.f32 1.442695, %v1365_v11  ;;  %2916 = vmatpush3.bf16.msra.mxu1 %v3002_v28 }
 0x626   : > { %v1346_v19 = vpop.xlane.xlu1 %1345  ;;  %v1349_v44 = vpop.xlane.xlu0 %1348  ;;  %2917 = vmatprep.subr.bf16.mxu1 %v3003_v47 }
 0x627   : > { %3062 = vpow2.f32 %v1373_v43  ;;  %v1366_v3 = vsub.f32 %v1313_v54, %v1346_v19  ;;  %v1367_v57 = vsub.f32 %v2893_v24, %v1349_v44  ;;  %v3005_v54 = vld [vmem:[#allocation6] sm:$0xff]  }
 0x629   : > { %v1375_v26 = vmul.f32 1.442695, %v1366_v3  ;;  %v1377_v20 = vmul.f32 1.442695, %v1367_v57  ;;  %2918 = vmatpush3.bf16.msra.mxu1 %v3003_v47 }
 0x62a   : > { %v1352_v21 = vpop.xlane.xlu0 %1351 }
 0x62b   : > { %3064 = vpow2.f32 %v1375_v26  ;;  %v1368_v60 = vsub.f32 %v2894_v10, %v1352_v21  ;;  %v3004_v10 = vld [vmem:[#allocation6 + $0x8] sm:$0xff]  }
 0x62c   : > { %3066 = vpow2.f32 %v1377_v20  ;;  %2919 = vmatprep.subr.bf16.mxu1 %v3004_v10 }
 0x62d   : > { %v1379_v34 = vmul.f32 1.442695, %v1368_v60  ;;  %2920 = vmatpush3.bf16.msra.mxu1 %v3004_v10 }
 0x62e   : > { %v1355_v50 = vpop.xlane.xlu0 %1354  ;;  %v1358_v35 = vpop.xlane.xlu1 %1357  ;;  %2921 = vmatprep.subr.bf16.mxu1 %v3005_v54 }
 0x62f   : > { %3068 = vpow2.f32 %v1379_v34  ;;  %v1369_v29 = vsub.f32 %v1326_v32, %v1355_v50  ;;  %v1370_v58 = vsub.f32 %v1329_v14, %v1358_v35 }
 0x631   : > { %v1381_v59 = vmul.f32 1.442695, %v1369_v29  ;;  %v1383_v33 = vmul.f32 1.442695, %v1370_v58  ;;  %2922 = vmatpush3.bf16.msra.mxu1 %v3005_v54 }
 0x632   : > { %v1361_v61 = vpop.xlane.xlu0 %1360  ;;  %v1364_v42 = vpop.xlane.xlu1 %1363 }
 0x633   : > { %3070 = vpow2.f32 %v1381_v59  ;;  %v1371_v39 = vsub.f32 %v2897_v30, %v1361_v61  ;;  %v1372_v38 = vsub.f32 %v2898_v13, %v1364_v42 }
 0x634   : > { %v3063_v62 = vpop.eup %3062  ;;  %3072 = vpow2.f32 %v1383_v33 }
 0x635   : > { %v1385_v0 = vmul.f32 1.442695, %v1371_v39  ;;  %v1387_v2 = vmul.f32 1.442695, %v1372_v38  ;;  %v1389_v52 = vsel %vm632_vm0, %v3063_v62, 0.0 }
 0x636   : > { %1390 = vadd.xlane.f32.xlu0 %v1389_v52 }
 0x637   : > { %3074 = vpow2.f32 %v1385_v0 }
 0x638   : > { %v3065_v25 = vpop.eup %3064  ;;  %3076 = vpow2.f32 %v1387_v2 }
 0x639   : > { %v3067_v45 = vpop.eup %3066  ;;  %v1392_v4 = vsel %vm632_vm0, %v3065_v25, 0.0  ;;  %v1413_v15 = vpack.c.bf16 %v3065_v25, %v3063_v62  ;;  %v2749_v25 = vld [vmem:[#allocation7] ss:$0 sm:$0xff] }
 0x63a   : > { %v1395_v16 = vsel %vm632_vm0, %v3067_v45, 0.0  ;;  %1393 = vadd.xlane.f32.xlu1 %v1392_v4 }
 0x63b   : > { %1396 = vadd.xlane.f32.xlu0 %v1395_v16  ;;  %2907 = vmatprep.mubr.msk.bf16.mxu0 %vm632_vm0, %v1413_v15 }
 0x63c   : > { %v3069_v5 = vpop.eup %3068 }
 0x63d   : > { %v1398_v8 = vsel %vm632_vm0, %v3069_v5, 0.0  ;;  %v1414_v49 = vpack.c.bf16 %v3069_v5, %v3067_v45  ;;  %v3190_v5 = vld [vmem:[%s3524_s0] sm:$0xff] }
 0x63e   : > { %1399 = vadd.xlane.f32.xlu1 %v1398_v8 }
 0x63f   : > { %2908 = vmatmul.mubr.msk.bf16.vlgmr.msra.gmra.mxu0 %vm632_vm0, %v1414_v49 }
 0x640   : > { %v3071_v17 = vpop.eup %3070 }
 0x641   : > { %v3073_v51 = vpop.eup %3072  ;;  %v1401_v22 = vsel %vm632_vm0, %v3071_v17, 0.0 }
 0x642   : > { %1402 = vadd.xlane.f32.xlu0 %v1401_v22  ;;  %v1404_v1 = vsel %vm632_vm0, %v3073_v51, 0.0  ;;  %v1415_v6 = vpack.c.bf16 %v3073_v51, %v3071_v17  ;;  %v3191_v17 = vld [vmem:[%s3524_s0 + $0x10] sm:$0xff] }
 0x643   : > { %1405 = vadd.xlane.f32.xlu1 %v1404_v1 }
 0x644   : > { %v3075_v48 = vpop.eup %3074  ;;  %2911 = vmatprep.mubr.msk.bf16.mxu0 %vm632_vm0, %v1415_v6 }
 0x645   : > { %v3077_v36 = vpop.eup %3076  ;;  %v1407_v23 = vsel %vm632_vm0, %v3075_v48, 0.0 }
 0x646   : > { %1408 = vadd.xlane.f32.xlu0 %v1407_v23  ;;  %v1410_v46 = vsel %vm632_vm0, %v3077_v36, 0.0  ;;  %v1416_v24 = vpack.c.bf16 %v3077_v36, %v3075_v48  ;;  %v3192_v48 = vld [vmem:[%s3524_s0 + $0x8] sm:$0xff] }
 0x647   : > { %1411 = vadd.xlane.f32.xlu1 %v1410_v46  ;;  %v3193_v46 = vld [vmem:[%s3524_s0 + $0x18] sm:$0xff] }
 0x648   : > { %2912 = vmatmul.mubr.msk.bf16.gmra.mxu0 %vm632_vm0, %v1416_v24 }
 0x649   : > { %1938 = vmatprep.mubr.bf16.mxu0 %v3328_v63 }
 0x6bf   : > { %v1391_v31 = vpop.xlane.xlu0 %1390 }
 0x6c0   : > { %3078 = vrcp.f32 %v1391_v31 }
 0x6c3   : > { %v1394_v27 = vpop.xlane.xlu1 %1393 }
 0x6c4   : > { %v1397_v32 = vpop.xlane.xlu0 %1396 }
 0x6c7   : > { %v1400_v30 = vpop.xlane.xlu1 %1399 }
 0x6c8   : > { %3080 = vrcp.f32 %v1400_v30  ;;  %v3194_v30 = vld [vmem:[%s3524_s0 + $0x20] sm:$0xff] }
 0x6c9   : > { %3082 = vrcp.f32 %v1394_v27 }
 0x6ca   : > { %3084 = vrcp.f32 %v1397_v32 }
 0x6cb   : > { %v1403_v13 = vpop.xlane.xlu0 %1402 }
 0x6cc   : > { %v1406_v55 = vpop.xlane.xlu1 %1405  ;;  %3086 = vrcp.f32 %v1403_v13 }
 0x6cd   : > { %v3079_v56 = vpop.eup %3078 }
 0x6cf   : > { %v1409_v37 = vpop.xlane.xlu0 %1408 }
 0x6d0   : > { %v1412_v14 = vpop.xlane.xlu1 %1411 }
 0x6d1   : > { %3088 = vrcp.f32 %v1412_v14  ;;  %v3195_v14 = vld [vmem:[%s3524_s0 + $0x30] sm:$0xff] }
 0x6d2   : > { %3090 = vrcp.f32 %v1406_v55 }
 0x6d3   : > { %3092 = vrcp.f32 %v1409_v37 }
 0x6d5   : > { %v3081_v11 = vpop.eup %3080 }
 0x6d6   : > { %v3083_v43 = vpop.eup %3082 }
 0x6d7   : > { %v3085_v3 = vpop.eup %3084 }
 0x6d9   : > { %v3087_v35 = vpop.eup %3086 }
 0x6de   : > { %v3089_v58 = vpop.eup %3088 }
 0x6df   : > { %v3091_v59 = vpop.eup %3090 }
 0x6e0   : > { %v3093_v42 = vpop.eup %3092 }
 0x6ff   : > { %v2909_v40 = vpop.f32.mrf.mxu0 }
 0x700   : > { %v1504_v20 = vmul.f32 %v3085_v3, %v2909_v40 }
 0x701   : > { %v1463_v41 = vpop.f32.mrf.mxu0 }
 0x702   : > { %v1502_v57 = vmul.f32 %v3079_v56, %v1463_v41 }
 0x703   : > { %v2910_v53 = vpop.f32.mrf.mxu0 }
 0x704   : > { %v1505_v19 = vmul.f32 %v3081_v11, %v2910_v53  ;;  %v3196_v53 = vld [vmem:[%s3524_s0 + $0x28] sm:$0xff] }
 0x705   : > { %v1466_v44 = vpop.f32.mrf.mxu0 }
 0x706   : > { %v1503_v26 = vmul.f32 %v3083_v43, %v1466_v44  ;;  %v1511_v34 = vpack.c.bf16 %v1505_v19, %v1504_v20  ;;  %v3197_v43 = vld [vmem:[%s3524_s0 + $0x38] sm:$0xff] }
 0x708   : > { %v1510_v21 = vpack.c.bf16 %v1503_v26, %v1502_v57  ;;  %v2913_v60 = vpop.f32.mrf.mxu0 }
 0x709   : > { %v1508_v62 = vmul.f32 %v3093_v42, %v2913_v60 }
 0x70a   : > { %v1479_v50 = vpop.f32.mrf.mxu0  ;;  %2923 = vmatprep.mubr.msk.bf16.mxu1 %vm632_vm0, %v1510_v21 }
 0x70b   : > { %2924 = vmatmul.mubr.msk.bf16.vlgmr.msra.gmra.mxu1 %vm632_vm0, %v1511_v34  ;;  %v1506_v39 = vmul.f32 %v3087_v35, %v1479_v50 }
 0x70c   : > { %v2914_v29 = vpop.f32.mrf.mxu0 }
 0x70d   : > { %v1509_v33 = vmul.f32 %v3089_v58, %v2914_v29 }
 0x70e   : > { %v1482_v61 = vpop.f32.mrf.mxu0 }
 0x70f   : > { %v1507_v38 = vmul.f32 %v3091_v59, %v1482_v61  ;;  %v1513_v2 = vpack.c.bf16 %v1509_v33, %v1508_v62 }
 0x711   : > { %v1512_v0 = vpack.c.bf16 %v1507_v38, %v1506_v39 }
 0x713   : > { %2927 = vmatprep.mubr.msk.bf16.mxu1 %vm632_vm0, %v1512_v0 }
 0x714   : > { %2928 = vmatmul.mubr.msk.bf16.gmra.mxu1 %vm632_vm0, %v1513_v2 }
 0x715   : > { %2011 = vmatprep.mubr.bf16.mxu1 %v3328_v63 }
 0x7cb   : > { %v2925_v52 = vpop.f32.mrf.mxu1 }
 0x7cc   : > { %v1608_v4 = vadd.f32 %v2925_v52, %v2749_v25 }
 0x7cd   : > { %v1599_v45 = vpop.f32.mrf.mxu1 }
 0x7ce   : > { %v1600_v15 = vadd.f32 %v2749_v25, %v1599_v45  ;;  %v4018_v51 = vadd.f32 %v3191_v17, %v1608_v4 }
 0x7cf   : > { %v2926_v16 = vpop.f32.mrf.mxu1 }
 0x7d0   : > { %v4015_v8 = vadd.f32 %v3190_v5, %v1600_v15  ;;  %v1611_v22 = vadd.f32 %v2926_v16, %v2749_v25  ;;  %v1646_v10 = vsel %vm632_vm0, %v4018_v51, 0.0 }
 0x7d1   : > { %v1602_v49 = vpop.f32.mrf.mxu1 }
 0x7d2   : > { %v1603_v1 = vadd.f32 %v2749_v25, %v1602_v49  ;;  %v1640_v6 = vsel %vm632_vm0, %v4015_v8, 0.0  ;;  %v4026_v24 = vadd.f32 %v3193_v46, %v1611_v22 }
 0x7d3   : > { %1641 = vadd.xlane.f32.xlu0 %v1640_v6 }
 0x7d4   : > { %v4023_v36 = vadd.f32 %v3192_v48, %v1603_v1  ;;  %v2929_v23 = vpop.f32.mrf.mxu1  ;;  %v1649_v13 = vsel %vm632_vm0, %v4026_v24, 0.0 }
 0x7d5   : > { %v1624_v54 = vadd.f32 %v2929_v23, %v2749_v25 }
 0x7d6   : > { %v1615_v28 = vpop.f32.mrf.mxu1  ;;  %v1643_v47 = vsel %vm632_vm0, %v4023_v36, 0.0 }
 0x7d7   : > { %v1616_v27 = vadd.f32 %v2749_v25, %v1615_v28  ;;  %1644 = vadd.xlane.f32.xlu1 %v1643_v47  ;;  %1647 = vadd.xlane.f32.xlu0 %v1646_v10  ;;  %v4038_v37 = vadd.f32 %v3195_v14, %v1624_v54  ;;  %v3006_v14 = vld [vmem:[%s4632_s11 + $0x60] ss:$16 sps:$4 sm:$0xff]  }
 0x7d8   : > { %v2930_v31 = vpop.f32.mrf.mxu1 }
 0x7d9   : > { %v4033_v32 = vadd.f32 %v3194_v30, %v1616_v27  ;;  %v1627_v40 = vadd.f32 %v2930_v31, %v2749_v25  ;;  %v1658_v3 = vsel %vm632_vm0, %v4038_v37, 0.0 }
 0x7da   : > { %v1618_v55 = vpop.f32.mrf.mxu1 }
 0x7db   : > { %v1619_v41 = vadd.f32 %v2749_v25, %v1618_v55  ;;  %1650 = vadd.xlane.f32.xlu1 %v1649_v13  ;;  %v1652_v56 = vsel %vm632_vm0, %v4033_v32, 0.0  ;;  %v4046_v19 = vadd.f32 %v3197_v43, %v1627_v40  ;;  %v3008_v55 = vld [vmem:[%s4632_s11 + $0x64] ss:$16 sps:$4 sm:$0xff]   ;;  %v3011_v13 = vld [vmem:[%s4632_s11 + $0x6c] ss:$16 sps:$4 sm:$0xff]  }
 0x7dc   : > { %1653 = vadd.xlane.f32.xlu0 %v1652_v56  ;;  %v3009_v40 = vld [vmem:[%s4632_s11 + $0x68] ss:$16 sps:$4 sm:$0xff]   ;;  %1914 = vmatprep.subr.bf16.mxu0 %v3008_v55  ;;  %v3017_v56 = vld [vmem:[%s4632_s11 + $0x4c] ss:$16 sps:$4 sm:$0xff]  }
 0x7dd   : > { %v4043_v11 = vadd.f32 %v3196_v53, %v1619_v41  ;;  %v1661_v57 = vsel %vm632_vm0, %v4046_v19, 0.0  ;;  %1987 = vmatprep.subr.bf16.mxu1 %v3011_v13  ;;  %1915 = vmatpush1.bf16.msra.mxu0 %v3006_v14  ;;  %v3014_v41 = vld [vmem:[%s4632_s11 + $0x44] ss:$16 sps:$4 sm:$0xff]   ;;  %v3012_v53 = vld [vmem:[%s4632_s11 + $0x40] ss:$16 sps:$4 sm:$0xff]  }
 0x7de   : > { %1988 = vmatpush1.bf16.msra.mxu1 %v3009_v40  ;;  %v3015_v43 = vld [vmem:[%s4632_s11 + $0x48] ss:$16 sps:$4 sm:$0xff]   ;;  %1916 = vmatprep.subr.bf16.mxu0 %v3014_v41  ;;  %v2759_v41 = vld [vmem:[%s4631_s10] ss:$0 sm:$0xff] }
 0x7df   : > { %v1655_v44 = vsel %vm632_vm0, %v4043_v11, 0.0  ;;  %1989 = vmatprep.subr.bf16.mxu1 %v3017_v56 }
 0x7e0   : > { %1656 = vadd.xlane.f32.xlu1 %v1655_v44  ;;  %1659 = vadd.xlane.f32.xlu0 %v1658_v3  ;;  %v3020_v44 = vld [vmem:[%s4632_s11 + $0x24] ss:$16 sps:$4 sm:$0xff]   ;;  %v3023_v3 = vld [vmem:[%s4632_s11 + $0x2c] ss:$16 sps:$4 sm:$0xff]  }
 0x7e1   : > { %1917 = vmatpush1.bf16.msra.mxu0 %v3012_v53 }
 0x7e2   : > { %1990 = vmatpush1.bf16.msra.mxu1 %v3015_v43  ;;  %1918 = vmatprep.subr.bf16.mxu0 %v3020_v44 }
 0x7e3   : > { %1991 = vmatprep.subr.bf16.mxu1 %v3023_v3 }
 0x7e4   : > { %1662 = vadd.xlane.f32.xlu1 %v1661_v57  ;;  %v3018_v57 = vld [vmem:[%s4632_s11 + $0x20] ss:$16 sps:$4 sm:$0xff]  }
 0x7e5   : > { %1919 = vmatpush1.bf16.msra.mxu0 %v3018_v57 }
 0x85c   : > { %v1642_v26 = vpop.xlane.xlu0 %1641 }
 0x85d   : > { %v1664_v20 = vmul.f32 0.015625, %v1642_v26  ;;  %v3021_v26 = vld [vmem:[%s4632_s11 + $0x28] ss:$16 sps:$4 sm:$0xff]  }
 0x85e   : > { %1992 = vmatpush1.bf16.msra.mxu1 %v3021_v26 }
 0x85f   : > { %v4055_v21 = vsub.f32 %v4015_v8, %v1664_v20  ;;  %v3024_v20 = vld [vmem:[%s4632_s11] ss:$16 sps:$4 sm:$0xff]  }
 0x860   : > { %v1648_v60 = vpop.xlane.xlu0 %1647  ;;  %v1645_v34 = vpop.xlane.xlu1 %1644 }
 0x861   : > { %v1666_v50 = vmul.f32 0.015625, %v1648_v60  ;;  %v1665_v35 = vmul.f32 0.015625, %v1645_v34  ;;  %v1680_v29 = vmul.f32 %v4055_v21, %v4055_v21  ;;  %v3026_v60 = vld [vmem:[%s4632_s11 + $0x4] ss:$16 sps:$4 sm:$0xff]   ;;  %v3027_v34 = vld [vmem:[%s4632_s11 + $0x8] ss:$16 sps:$4 sm:$0xff]  }
 0x862   : > { %1920 = vmatprep.subr.bf16.mxu0 %v3026_v60 }
 0x863   : > { %v4060_v58 = vsub.f32 %v4018_v51, %v1666_v50  ;;  %v4063_v59 = vsub.f32 %v4023_v36, %v1665_v35  ;;  %v1688_v33 = vsel %vm632_vm0, %v1680_v29, 0.0  ;;  %v3029_v50 = vld [vmem:[%s4632_s11 + $0xc] ss:$16 sps:$4 sm:$0xff]   ;;  %1921 = vmatpush1.bf16.msra.mxu0 %v3024_v20 }
 0x864   : > { %1689 = vadd.xlane.f32.xlu0 %v1688_v33  ;;  %v1651_v61 = vpop.xlane.xlu1 %1650  ;;  %1993 = vmatprep.subr.bf16.mxu1 %v3029_v50 }
 0x865   : > { %v1654_v42 = vpop.xlane.xlu0 %1653  ;;  %v1667_v39 = vmul.f32 0.015625, %v1651_v61  ;;  %v1682_v38 = vmul.f32 %v4060_v58, %v4060_v58  ;;  %v1681_v62 = vmul.f32 %v4063_v59, %v4063_v59  ;;  %1994 = vmatpush1.bf16.msra.mxu1 %v3027_v34 }
 0x866   : > { %v1668_v0 = vmul.f32 0.015625, %v1654_v42 }
 0x867   : > { %v4071_v2 = vsub.f32 %v4026_v24, %v1667_v39  ;;  %v1694_v52 = vsel %vm632_vm0, %v1682_v38, 0.0  ;;  %v1691_v25 = vsel %vm632_vm0, %v1681_v62, 0.0 }
 0x868   : > { %v4076_v45 = vsub.f32 %v4033_v32, %v1668_v0  ;;  %1695 = vadd.xlane.f32.xlu0 %v1694_v52  ;;  %1692 = vadd.xlane.f32.xlu1 %v1691_v25 }
 0x869   : > { %v1660_v4 = vpop.xlane.xlu0 %1659  ;;  %v1657_v15 = vpop.xlane.xlu1 %1656  ;;  %v1683_v16 = vmul.f32 %v4071_v2, %v4071_v2 }
 0x86a   : > { %v1670_v5 = vmul.f32 0.015625, %v1660_v4  ;;  %v1669_v49 = vmul.f32 0.015625, %v1657_v15  ;;  %v1684_v17 = vmul.f32 %v4076_v45, %v4076_v45 }
 0x86b   : > { %v1697_v22 = vsel %vm632_vm0, %v1683_v16, 0.0 }
 0x86c   : > { %v4084_v1 = vsub.f32 %v4038_v37, %v1670_v5  ;;  %v4087_v6 = vsub.f32 %v4043_v11, %v1669_v49  ;;  %v1700_v48 = vsel %vm632_vm0, %v1684_v17, 0.0  ;;  %1698 = vadd.xlane.f32.xlu1 %v1697_v22 }
 0x86d   : > { %1701 = vadd.xlane.f32.xlu0 %v1700_v48  ;;  %v1663_v23 = vpop.xlane.xlu1 %1662 }
 0x86e   : > { %v1671_v46 = vmul.f32 0.015625, %v1663_v23  ;;  %v1686_v28 = vmul.f32 %v4084_v1, %v4084_v1  ;;  %v1685_v47 = vmul.f32 %v4087_v6, %v4087_v6 }
 0x870   : > { %v4095_v10 = vsub.f32 %v4046_v19, %v1671_v46  ;;  %v1706_v54 = vsel %vm632_vm0, %v1686_v28, 0.0  ;;  %v1703_v27 = vsel %vm632_vm0, %v1685_v47, 0.0 }
 0x871   : > { %1707 = vadd.xlane.f32.xlu0 %v1706_v54  ;;  %1704 = vadd.xlane.f32.xlu1 %v1703_v27  ;;  %v2758_v27 = vld [vmem:[%s4630_s9] ss:$0 sm:$0xff] }
 0x872   : > { %v1687_v31 = vmul.f32 %v4095_v10, %v4095_v10 }
 0x874   : > { %v1709_v30 = vsel %vm632_vm0, %v1687_v31, 0.0 }
 0x875   : > { %1710 = vadd.xlane.f32.xlu1 %v1709_v30 }
 0x8ed   : > { %v1690_v35 = vpop.xlane.xlu0 %1689 }
 0x8ee   : > { %v1712_v29 = vmul.f32 0.015625, %v1690_v35 }
 0x8f0   : > { %v1720_v33 = vadd.f32 1e-06, %v1712_v29 }
 0x8f1   : > { %v1696_v61 = vpop.xlane.xlu0 %1695  ;;  %v1693_v42 = vpop.xlane.xlu1 %1692 }
 0x8f2   : > { %3094 = vrsqrt.f32 %v1720_v33  ;;  %v1714_v39 = vmul.f32 0.015625, %v1696_v61  ;;  %v1713_v38 = vmul.f32 0.015625, %v1693_v42 }
 0x8f4   : > { %v1721_v62 = vadd.f32 1e-06, %v1713_v38  ;;  %v1722_v0 = vadd.f32 1e-06, %v1714_v39 }
 0x8f5   : > { %v1699_v52 = vpop.xlane.xlu1 %1698 }
 0x8f6   : > { %v1702_v25 = vpop.xlane.xlu0 %1701  ;;  %v1715_v4 = vmul.f32 0.015625, %v1699_v52  ;;  %3096 = vrsqrt.f32 %v1721_v62 }
 0x8f7   : > { %3098 = vrsqrt.f32 %v1722_v0  ;;  %v1716_v16 = vmul.f32 0.015625, %v1702_v25 }
 0x8f8   : > { %v1723_v15 = vadd.f32 1e-06, %v1715_v4 }
 0x8f9   : > { %v1724_v17 = vadd.f32 1e-06, %v1716_v16 }
 0x8fa   : > { %3100 = vrsqrt.f32 %v1723_v15  ;;  %v1705_v5 = vpop.xlane.xlu1 %1704  ;;  %v1708_v48 = vpop.xlane.xlu0 %1707 }
 0x8fb   : > { %v1717_v49 = vmul.f32 0.015625, %v1705_v5  ;;  %v1718_v54 = vmul.f32 0.015625, %v1708_v48 }
 0x8fd   : > { %v1725_v22 = vadd.f32 1e-06, %v1717_v49  ;;  %v1726_v14 = vadd.f32 1e-06, %v1718_v54 }
 0x8fe   : > { %v1711_v23 = vpop.xlane.xlu1 %1710 }
 0x8ff   : > { %v3095_v46 = vpop.eup %3094  ;;  %v1719_v28 = vmul.f32 0.015625, %v1711_v23  ;;  %3102 = vrsqrt.f32 %v1725_v22 }
 0x900   : > { %v1736_v47 = vmul.f32 %v3095_v46, %v4055_v21  ;;  %3104 = vrsqrt.f32 %v1724_v17 }
 0x901   : > { %v1727_v31 = vadd.f32 1e-06, %v1719_v28 }
 0x902   : > { %v1750_v55 = vmul.f32 %v2758_v27, %v1736_v47 }
 0x903   : > { %v3097_v30 = vpop.eup %3096  ;;  %3106 = vrsqrt.f32 %v1727_v31 }
 0x904   : > { %v1737_v13 = vmul.f32 %v3097_v30, %v4063_v59  ;;  %v3099_v40 = vpop.eup %3098  ;;  %3108 = vrsqrt.f32 %v1726_v14  ;;  %v1764_v43 = vadd.f32 %v2759_v41, %v1750_v55 }
 0x905   : > { %v1738_v3 = vmul.f32 %v3099_v40, %v4060_v58 }
 0x906   : > { %v1751_v53 = vmul.f32 %v2758_v27, %v1737_v13 }
 0x907   : > { %v3101_v56 = vpop.eup %3100  ;;  %v1752_v59 = vmul.f32 %v2758_v27, %v1738_v3 }
 0x908   : > { %v1739_v21 = vmul.f32 %v3101_v56, %v4071_v2  ;;  %v1765_v44 = vadd.f32 %v2759_v41, %v1751_v53 }
 0x909   : > { %v1766_v50 = vadd.f32 %v2759_v41, %v1752_v59 }
 0x90a   : > { %v1772_v57 = vpack.c.bf16 %v1765_v44, %v1764_v43  ;;  %v1753_v26 = vmul.f32 %v2758_v27, %v1739_v21 }
 0x90c   : > { %v3103_v20 = vpop.eup %3102  ;;  %2776 = vmatmul.mubr.msk.bf16.vlgmr.msra.gmra.mxu0 %vm632_vm0, %v1772_v57  ;;  %2780 = vmatmul.mubr.msk.bf16.vlgmr.msra.gmra.mxu1 %vm632_vm0, %v1772_v57  ;;  %v1767_v34 = vadd.f32 %v2759_v41, %v1753_v26 }
 0x90d   : > { %v3105_v60 = vpop.eup %3104  ;;  %1948 = vmatprep.mubr.bf16.mxu0 %v3328_v63  ;;  %2021 = vmatprep.mubr.bf16.mxu1 %v3328_v63  ;;  %v1741_v2 = vmul.f32 %v3103_v20, %v4087_v6 }
 0x90e   : > { %v1740_v35 = vmul.f32 %v3105_v60, %v4076_v45  ;;  %v1773_v58 = vpack.c.bf16 %v1767_v34, %v1766_v50 }
 0x90f   : > { %v1755_v29 = vmul.f32 %v2758_v27, %v1741_v2 }
 0x910   : > { %v3107_v33 = vpop.eup %3106  ;;  %v1754_v61 = vmul.f32 %v2758_v27, %v1740_v35 }
 0x911   : > { %v3109_v42 = vpop.eup %3108  ;;  %v1769_v39 = vadd.f32 %v2759_v41, %v1755_v29  ;;  %v1743_v38 = vmul.f32 %v3107_v33, %v4095_v10 }
 0x912   : > { %v1768_v6 = vadd.f32 %v2759_v41, %v1754_v61  ;;  %v1742_v62 = vmul.f32 %v3109_v42, %v4084_v1  ;;  %v4181_v1 = vld [vmem:[%s4633_s12] sm:$0xf] }
 0x913   : > { %v1757_v0 = vmul.f32 %v2758_v27, %v1743_v38  ;;  %v4185_v10 = vrot.slane %v4181_v1, %v3626_v12  ;;  %v4189_v16 = vrot.slane %v4181_v1, %v3633_v18 }
 0x914   : > { %2777 = vmatmul.mubr.msk.bf16.gmra.mxu0 %vm632_vm0, %v1773_v58  ;;  %2781 = vmatmul.mubr.msk.bf16.gmra.mxu1 %vm632_vm0, %v1773_v58  ;;  %v1774_v45 = vpack.c.bf16 %v1769_v39, %v1768_v6  ;;  %v1756_v52 = vmul.f32 %v2758_v27, %v1742_v62 }
 0x915   : > { %1958 = vmatprep.mubr.bf16.mxu0 %v3328_v63  ;;  %2031 = vmatprep.mubr.bf16.mxu1 %v3328_v63  ;;  %v1771_v25 = vadd.f32 %v2759_v41, %v1757_v0 }
 0x916   : > { %v1770_v4 = vadd.f32 %v2759_v41, %v1756_v52 }
 0x918   : > { %v1775_v15 = vpack.c.bf16 %v1771_v25, %v1770_v4 }
 0x91c   : > { %2778 = vmatmul.mubr.msk.bf16.gmra.mxu0 %vm632_vm0, %v1774_v45  ;;  %2782 = vmatmul.mubr.msk.bf16.gmra.mxu1 %vm632_vm0, %v1774_v45 }
 0x91d   : > { %1968 = vmatprep.mubr.bf16.mxu0 %v3328_v63  ;;  %2041 = vmatprep.mubr.bf16.mxu1 %v3328_v63 }
 0x924   : > { %2779 = vmatmul.mubr.msk.bf16.gmra.mxu0 %vm632_vm0, %v1775_v15  ;;  %2783 = vmatmul.mubr.msk.bf16.gmra.mxu1 %vm632_vm0, %v1775_v15 }
 0x9cc   : > { %v1940_v63 = vpop.f32.mrf.mxu0  ;;  %v4195_v22 = vpop.f32.mrf.mxu1 }
 0x9cd   : > { %v4192_v5 = vadd.f32 %v1940_v63, %v4185_v10 }
 0x9ce   : > { %v1942_v49 = vpop.f32.mrf.mxu0  ;;  %v4204_v54 = vpop.f32.mrf.mxu1 }
 0x9cf   : > { %v2784_v17 = vmul.f32 -1.442695, %v4192_v5  ;;  %v4198_v48 = vadd.f32 %v1942_v49, %v4189_v16 }
 0x9d0   : > { %v1944_v23 = vpop.f32.mrf.mxu0  ;;  %v4214_v40 = vpop.f32.mrf.mxu1 }
 0x9d1   : > { %3110 = vpow2.f32 %v2784_v17  ;;  %v2785_v46 = vmul.f32 -1.442695, %v4198_v48  ;;  %v4202_v28 = vadd.f32 %v1944_v23, %v4185_v10 }
 0x9d2   : > { %v1946_v47 = vpop.f32.mrf.mxu0  ;;  %v4224_v3 = vpop.f32.mrf.mxu1 }
 0x9d3   : > { %3112 = vpow2.f32 %v2785_v46  ;;  %v2786_v27 = vmul.f32 -1.442695, %v4202_v28  ;;  %v4208_v31 = vadd.f32 %v1946_v47, %v4189_v16 }
 0x9d4   : > { %v1950_v30 = vpop.f32.mrf.mxu0  ;;  %v4234_v35 = vpop.f32.mrf.mxu1 }
 0x9d5   : > { %3114 = vpow2.f32 %v2786_v27  ;;  %v2787_v55 = vmul.f32 -1.442695, %v4208_v31  ;;  %v4212_v13 = vadd.f32 %v1950_v30, %v4185_v10 }
 0x9d6   : > { %v1952_v14 = vpop.f32.mrf.mxu0  ;;  %v4244_v0 = vpop.f32.mrf.mxu1 }
 0x9d7   : > { %3116 = vpow2.f32 %v2787_v55  ;;  %v2788_v41 = vmul.f32 -1.442695, %v4212_v13  ;;  %v4218_v56 = vadd.f32 %v1952_v14, %v4189_v16 }
 0x9d8   : > { %v1954_v53 = vpop.f32.mrf.mxu0  ;;  %v4254_v27 = vpop.f32.mrf.mxu1 }
 0x9d9   : > { %3118 = vpow2.f32 %v2788_v41  ;;  %v2789_v21 = vmul.f32 -1.442695, %v4218_v56  ;;  %v4222_v43 = vadd.f32 %v1954_v53, %v4185_v10  ;;  %v1804_v41 = vsub.s32 2, %v3623_v9 }
 0x9da   : > { %v1956_v44 = vpop.f32.mrf.mxu0  ;;  %v1808_v53 = vsub.s32 3, %v3623_v9 }
 0x9db   : > { %3120 = vpow2.f32 %v2789_v21  ;;  %v2790_v57 = vmul.f32 -1.442695, %v4222_v43  ;;  %v4228_v26 = vadd.f32 %v1956_v44, %v4189_v16 }
 0x9dc   : > { %v1960_v20 = vpop.f32.mrf.mxu0 }
 0x9dd   : > { %3122 = vpow2.f32 %v2790_v57  ;;  %v2791_v59 = vmul.f32 -1.442695, %v4228_v26  ;;  %v4232_v60 = vadd.f32 %v1960_v20, %v4185_v10 }
 0x9de   : > { %v3111_v34 = vpop.eup %3110  ;;  %v1962_v2 = vpop.f32.mrf.mxu0 }
 0x9df   : > { %v2100_v50 = vadd.f32 1.0, %v3111_v34  ;;  %3124 = vpow2.f32 %v2791_v59  ;;  %v2792_v58 = vmul.f32 -1.442695, %v4232_v60  ;;  %v4238_v29 = vadd.f32 %v1962_v2, %v4189_v16 }
 0x9e0   : > { %v3113_v33 = vpop.eup %3112  ;;  %v1964_v61 = vpop.f32.mrf.mxu0 }
 0x9e1   : > { %3126 = vrcp.f32 %v2100_v50  ;;  %v2101_v42 = vadd.f32 1.0, %v3113_v33  ;;  %v2793_v39 = vmul.f32 -1.442695, %v4238_v29  ;;  %v4242_v38 = vadd.f32 %v1964_v61, %v4185_v10  ;;  %v4266_v50 = vpop.f32.mrf.mxu1 }
 0x9e2   : > { %v3115_v6 = vpop.eup %3114  ;;  %3128 = vpow2.f32 %v2792_v58  ;;  %v1966_v62 = vpop.f32.mrf.mxu0  ;;  %v4273_v61 = vrot.slane %v4181_v1, %v1804_v41 }
 0x9e3   : > { %3130 = vrcp.f32 %v2101_v42  ;;  %v2102_v45 = vadd.f32 1.0, %v3115_v6  ;;  %v2794_v52 = vmul.f32 -1.442695, %v4242_v38  ;;  %v4248_v25 = vadd.f32 %v1966_v62, %v4189_v16 }
 0x9e4   : > { %v3117_v4 = vpop.eup %3116  ;;  %3132 = vpow2.f32 %v2793_v39  ;;  %v1970_v15 = vpop.f32.mrf.mxu0 }
 0x9e5   : > { %3134 = vrcp.f32 %v2102_v45  ;;  %v2103_v63 = vadd.f32 1.0, %v3117_v4  ;;  %v2795_v49 = vmul.f32 -1.442695, %v4248_v25  ;;  %v4252_v17 = vadd.f32 %v1970_v15, %v4185_v10 }
 0x9e6   : > { %v3119_v23 = vpop.eup %3118  ;;  %3136 = vpow2.f32 %v2794_v52  ;;  %v1972_v46 = vpop.f32.mrf.mxu0 }
 0x9e7   : > { %3138 = vrcp.f32 %v2103_v63  ;;  %v2104_v47 = vadd.f32 1.0, %v3119_v23  ;;  %v2796_v30 = vmul.f32 -1.442695, %v4252_v17  ;;  %v4258_v55 = vadd.f32 %v1972_v46, %v4189_v16 }
 0x9e8   : > { %v3121_v14 = vpop.eup %3120  ;;  %3140 = vpow2.f32 %v2795_v49  ;;  %v1974_v21 = vpop.f32.mrf.mxu0 }
 0x9e9   : > { %3142 = vrcp.f32 %v2104_v47  ;;  %v2105_v44 = vadd.f32 1.0, %v3121_v14  ;;  %v2797_v57 = vmul.f32 -1.442695, %v4258_v55  ;;  %v4264_v20 = vadd.f32 %v1974_v21, %v4185_v10 }
 0x9ea   : > { %v3123_v59 = vpop.eup %3122  ;;  %3144 = vpow2.f32 %v2796_v30  ;;  %v1976_v34 = vpop.f32.mrf.mxu0  ;;  %v4276_v10 = vrot.slane %v4181_v1, %v1808_v53  ;;  %v2014_v1 = vadd.f32 %v4195_v22, %v4273_v61 }
 0x9eb   : > { %3146 = vrcp.f32 %v2105_v44  ;;  %v2106_v2 = vadd.f32 1.0, %v3123_v59  ;;  %v2798_v58 = vmul.f32 -1.442695, %v4264_v20  ;;  %v4270_v9 = vadd.f32 %v1976_v34, %v4189_v16  ;;  %v4280_v16 = vpop.f32.mrf.mxu1 }
 0x9ec   : > { %v3125_v33 = vpop.eup %3124  ;;  %3148 = vpow2.f32 %v2797_v57  ;;  %v2016_v49 = vadd.f32 %v4204_v54, %v4276_v10  ;;  %v2020_v44 = vadd.f32 %v4224_v3, %v4276_v10  ;;  %v2024_v3 = vadd.f32 %v4234_v35, %v4273_v61 }
 0x9ed   : > { %3150 = vrcp.f32 %v2106_v2  ;;  %v2107_v42 = vadd.f32 1.0, %v3125_v33  ;;  %v2799_v39 = vmul.f32 -1.442695, %v4270_v9  ;;  %v2035_v41 = vpop.f32.mrf.mxu1 }
 0x9ee   : > { %v3127_v6 = vpop.eup %3126  ;;  %3152 = vpow2.f32 %v2798_v58 }
 0x9ef   : > { %v3129_v62 = vpop.eup %3128  ;;  %v2148_v45 = vmul.f32 %v3127_v6, %v4192_v5  ;;  %3154 = vrcp.f32 %v2107_v42  ;;  %v2037_v42 = vpop.f32.mrf.mxu1 }
 0x9f0   : > { %v3131_v52 = vpop.eup %3130  ;;  %v2108_v4 = vadd.f32 1.0, %v3129_v62  ;;  %3156 = vpow2.f32 %v2799_v39  ;;  %v2026_v62 = vadd.f32 %v4244_v0, %v4276_v10  ;;  %v2028_v0 = vadd.f32 %v4254_v27, %v4273_v61 }
 0x9f1   : > { %v3133_v15 = vpop.eup %3132  ;;  %v2149_v63 = vmul.f32 %v3131_v52, %v4198_v48  ;;  %v4287_v5 = vmul.f32 %v2148_v45, %v2014_v1  ;;  %v2018_v48 = vadd.f32 %v4214_v40, %v4273_v61 }
 0x9f2   : > { %v3135_v23 = vpop.eup %3134  ;;  %3158 = vrcp.f32 %v2108_v4  ;;  %v2109_v46 = vadd.f32 1.0, %v3133_v15 }
 0x9f3   : > { %v3137_v47 = vpop.eup %3136  ;;  %v4289_v30 = vmul.f32 %v2149_v63, %v2016_v49  ;;  %v2150_v14 = vmul.f32 %v3135_v23, %v4202_v28  ;;  %v2039_v49 = vpop.f32.mrf.mxu1 }
 0x9f4   : > { %v3139_v53 = vpop.eup %3138  ;;  %3160 = vrcp.f32 %v2109_v46  ;;  %v2110_v21 = vadd.f32 1.0, %v3137_v47  ;;  %v2030_v47 = vadd.f32 %v4266_v50, %v4276_v10  ;;  %v2034_v50 = vadd.f32 %v4280_v16, %v4273_v61 }
 0x9f5   : > { %v3141_v22 = vpop.eup %3140  ;;  %v2151_v54 = vmul.f32 %v3139_v53, %v4208_v31  ;;  %v2185_v57 = vadd.f32 %v4289_v30, %v4287_v5  ;;  %v4299_v2 = vmul.f32 %v2150_v14, %v2018_v48  ;;  %v2043_v48 = vpop.f32.mrf.mxu1  ;;  %v2040_v16 = vadd.f32 %v2039_v49, %v4276_v10 }
 0x9f6   : > { %v3143_v59 = vpop.eup %3142  ;;  %3162 = vrcp.f32 %v2110_v21  ;;  %v2111_v34 = vadd.f32 1.0, %v3141_v22 }
 0x9f7   : > { %v3145_v28 = vpop.eup %3144  ;;  %v4301_v58 = vmul.f32 %v2151_v54, %v2020_v44  ;;  %v2152_v33 = vmul.f32 %v3143_v59, %v4212_v13  ;;  %2186 = vadd.xlane.f32.xlu0 %v2185_v57  ;;  %v2036_v57 = vadd.f32 %v2035_v41, %v4276_v10 }
 0x9f8   : > { %v3147_v40 = vpop.eup %3146  ;;  %3164 = vrcp.f32 %v2111_v34  ;;  %v2112_v31 = vadd.f32 1.0, %v3145_v28  ;;  %v2045_v34 = vpop.f32.mrf.mxu1 }
 0x9f9   : > { %v3149_v39 = vpop.eup %3148  ;;  %v2153_v6 = vmul.f32 %v3147_v40, %v4218_v56  ;;  %v2188_v45 = vadd.f32 %v4301_v58, %v4299_v2  ;;  %v4311_v15 = vmul.f32 %v2152_v33, %v2024_v3 }
 0x9fa   : > { %v3151_v52 = vpop.eup %3150  ;;  %3166 = vrcp.f32 %v2112_v31  ;;  %v2113_v13 = vadd.f32 1.0, %v3149_v39  ;;  %v2038_v31 = vadd.f32 %v2037_v42, %v4273_v61  ;;  %v2047_v3 = vpop.f32.mrf.mxu1 }
 0x9fb   : > { %v3153_v4 = vpop.eup %3152  ;;  %v4313_v1 = vmul.f32 %v2153_v6, %v2026_v62  ;;  %v2154_v63 = vmul.f32 %v3151_v52, %v4222_v43  ;;  %2189 = vadd.xlane.f32.xlu1 %v2188_v45  ;;  %v2044_v52 = vadd.f32 %v2043_v48, %v4273_v61 }
 0x9fc   : > { %v3155_v35 = vpop.eup %3154  ;;  %3168 = vrcp.f32 %v2113_v13  ;;  %v2114_v56 = vadd.f32 1.0, %v3153_v4 }
 0x9fd   : > { %v3157_v23 = vpop.eup %3156  ;;  %v2155_v46 = vmul.f32 %v3155_v35, %v4228_v26  ;;  %v2191_v14 = vadd.f32 %v4313_v1, %v4311_v15  ;;  %v4323_v21 = vmul.f32 %v2154_v63, %v2028_v0  ;;  %v2049_v63 = vpop.f32.mrf.mxu1 }
 0x9fe   : > { %3170 = vrcp.f32 %v2114_v56  ;;  %v2115_v53 = vadd.f32 1.0, %v3157_v23  ;;  %v2048_v23 = vadd.f32 %v2047_v3, %v4273_v61  ;;  %v2181_v61 = vand.u32 127, %v780_v7 }
 0x9ff   : > { %v3159_v43 = vpop.eup %3158  ;;  %v4325_v22 = vmul.f32 %v2155_v46, %v2030_v47  ;;  %2192 = vadd.xlane.f32.xlu0 %v2191_v14 }
 0xa00   : > { %v2156_v54 = vmul.f32 %v3159_v43, %v4232_v60  ;;  %3172 = vrcp.f32 %v2115_v53 }
 0xa01   : > { %v3161_v27 = vpop.eup %3160  ;;  %v2194_v26 = vadd.f32 %v4325_v22, %v4323_v21 }
 0xa02   : > { %v2157_v44 = vmul.f32 %v3161_v27, %v4238_v29  ;;  %v4334_v28 = vmul.f32 %v2156_v54, %v2034_v50 }
 0xa03   : > { %v3163_v59 = vpop.eup %3162  ;;  %2195 = vadd.xlane.f32.xlu1 %v2194_v26 }
 0xa04   : > { %v4336_v33 = vmul.f32 %v2157_v44, %v2036_v57  ;;  %v2158_v60 = vmul.f32 %v3163_v59, %v4242_v38 }
 0xa05   : > { %v3165_v40 = vpop.eup %3164 }
 0xa06   : > { %v2159_v39 = vmul.f32 %v3165_v40, %v4248_v25  ;;  %v2197_v29 = vadd.f32 %v4336_v33, %v4334_v28  ;;  %v4344_v6 = vmul.f32 %v2158_v60, %v2038_v31  ;;  %v2046_v25 = vadd.f32 %v2045_v34, %v4276_v10 }
 0xa07   : > { %v3167_v41 = vpop.eup %3166 }
 0xa08   : > { %v4346_v62 = vmul.f32 %v2159_v39, %v2040_v16  ;;  %v2160_v45 = vmul.f32 %v3167_v41, %v4252_v17  ;;  %2198 = vadd.xlane.f32.xlu0 %v2197_v29 }
 0xa09   : > { %v3169_v38 = vpop.eup %3168 }
 0xa0a   : > { %v2161_v42 = vmul.f32 %v3169_v38, %v4258_v55  ;;  %v2200_v13 = vadd.f32 %v4346_v62, %v4344_v6  ;;  %v4354_v49 = vmul.f32 %v2160_v45, %v2044_v52  ;;  %v2050_v55 = vadd.f32 %v2049_v63, %v4276_v10 }
 0xa0b   : > { %v3171_v4 = vpop.eup %3170  ;;  %v4377_v10 = vadd.s32 128, %v2181_v61 }
 0xa0c   : > { %v4356_v35 = vmul.f32 %v2161_v42, %v2046_v25  ;;  %v2162_v56 = vmul.f32 %v3171_v4, %v4264_v20  ;;  %2201 = vadd.xlane.f32.xlu1 %v2200_v13  ;;  %v3030_v20 = vld [vmem:[%s4636_s15 + $0x78] sm:$0xff]  }
 0xa0d   : > { %v3173_v17 = vpop.eup %3172  ;;  %2843 = vmatprep.subr.bf16.mxu0 %v3030_v20  ;;  %vm2184_vm2 = vcmp.lt.s32.totalorder %v4377_v10, 170  ;;  %v3040_v10 = vld [vmem:[%s4636_s15 + $0x50] sm:$0xff]  }
 0xa0e   : > { %v2163_v0 = vmul.f32 %v3173_v17, %v4270_v9  ;;  %v2203_v46 = vadd.f32 %v4356_v35, %v4354_v49  ;;  %v4364_v47 = vmul.f32 %v2162_v56, %v2048_v23  ;;  %v3031_v9 = vld [vmem:[%s4636_s15 + $0x38] sm:$0xff]  }
 0xa0f   : > { %2844 = vmatpush3.bf16.msra.mxu0 %v3031_v9 }
 0xa10   : > { %v4366_v14 = vmul.f32 %v2163_v0, %v2050_v55  ;;  %2204 = vadd.xlane.f32.xlu0 %v2203_v46  ;;  %v3032_v46 = vld [vmem:[%s4636_s15 + $0x70] sm:$0xff]  }
 0xa11   : > { %2845 = vmatprep.subr.bf16.mxu0 %v3032_v46 }
 0xa12   : > { %v2206_v53 = vadd.f32 %v4366_v14, %v4364_v47 }
 0xa14   : > { %2207 = vadd.xlane.f32.xlu1 %v2206_v53 }
 0xa80   : > { %v2187_v43 = vpop.xlane.xlu0 %2186 }
 0xa81   : > { %v2209_v48 = vmul.f32 0.005882353, %v2187_v43 }
 0xa83   : > { %v4381_v54 = vsub.f32 %v4287_v5, %v2209_v48  ;;  %v2218_v27 = vsub.f32 %v4289_v30, %v2209_v48 }
 0xa84   : > { %v2190_v26 = vpop.xlane.xlu1 %2189 }
 0xa85   : > { %v4386_v50 = vsel %vm2184_vm2, %v2218_v27, 0.0  ;;  %v2253_v44 = vmul.f32 %v4381_v54, %v4381_v54  ;;  %v2210_v7 = vmul.f32 0.005882353, %v2190_v26  ;;  %v3034_v26 = vld [vmem:[%s4636_s15 + $0x68] sm:$0xff]  }
 0xa86   : > { %v2254_v57 = vmul.f32 %v4386_v50, %v4386_v50 }
 0xa87   : > { %v4393_v59 = vsub.f32 %v4299_v2, %v2210_v7  ;;  %v2220_v5 = vsub.f32 %v4301_v58, %v2210_v7 }
 0xa88   : > { %v2193_v34 = vpop.xlane.xlu0 %2192  ;;  %v2269_v60 = vadd.f32 %v2254_v57, %v2253_v44 }
 0xa89   : > { %v4398_v30 = vsel %vm2184_vm2, %v2220_v5, 0.0  ;;  %v2255_v40 = vmul.f32 %v4393_v59, %v4393_v59  ;;  %v2211_v31 = vmul.f32 0.005882353, %v2193_v34 }
 0xa8a   : > { %v2256_v39 = vmul.f32 %v4398_v30, %v4398_v30  ;;  %2270 = vadd.xlane.f32.xlu0 %v2269_v60 }
 0xa8b   : > { %v4405_v16 = vsub.f32 %v4311_v15, %v2211_v31  ;;  %v2222_v2 = vsub.f32 %v4313_v1, %v2211_v31  ;;  %v3036_v31 = vld [vmem:[%s4636_s15 + $0x60] sm:$0xff]  }
 0xa8c   : > { %v2196_v58 = vpop.xlane.xlu1 %2195  ;;  %v2272_v29 = vadd.f32 %v2256_v39, %v2255_v40 }
 0xa8d   : > { %v4410_v41 = vsel %vm2184_vm2, %v2222_v2, 0.0  ;;  %v2257_v3 = vmul.f32 %v4405_v16, %v4405_v16  ;;  %v2212_v45 = vmul.f32 0.005882353, %v2196_v58 }
 0xa8e   : > { %v2258_v38 = vmul.f32 %v4410_v41, %v4410_v41  ;;  %2273 = vadd.xlane.f32.xlu1 %v2272_v29 }
 0xa8f   : > { %v4417_v52 = vsub.f32 %v4323_v21, %v2212_v45  ;;  %v2224_v15 = vsub.f32 %v4325_v22, %v2212_v45  ;;  %v3038_v45 = vld [vmem:[%s4636_s15 + $0x58] sm:$0xff]  }
 0xa90   : > { %v2275_v1 = vadd.f32 %v2258_v38, %v2257_v3 }
 0xa91   : > { %v4422_v42 = vsel %vm2184_vm2, %v2224_v15, 0.0  ;;  %v2259_v25 = vmul.f32 %v4417_v52, %v4417_v52  ;;  %v2199_v13 = vpop.xlane.xlu0 %2198  ;;  %v3041_v15 = vld [vmem:[%s4636_s15 + $0x10] sm:$0xff]  }
 0xa92   : > { %v2260_v4 = vmul.f32 %v4422_v42, %v4422_v42  ;;  %v2213_v63 = vmul.f32 0.005882353, %v2199_v13  ;;  %2276 = vadd.xlane.f32.xlu0 %v2275_v1  ;;  %v3042_v1 = vld [vmem:[%s4636_s15 + $0x48] sm:$0xff]   ;;  %v3044_v13 = vld [vmem:[%s4636_s15 + $0x40] sm:$0xff]  }
 0xa94   : > { %v4429_v56 = vsub.f32 %v4334_v28, %v2213_v63  ;;  %v2226_v21 = vsub.f32 %v4336_v33, %v2213_v63  ;;  %v2278_v22 = vadd.f32 %v2260_v4, %v2259_v25  ;;  %v3033_v33 = vld [vmem:[%s4636_s15 + $0x30] sm:$0xff]   ;;  %v3043_v25 = vld [vmem:[%s4636_s15 + $0x8] sm:$0xff]   ;;  %v3045_v4 = vld [vmem:[%s4636_s15] sm:$0xff]  }
 0xa95   : > { %v2202_v17 = vpop.xlane.xlu1 %2201  ;;  %2846 = vmatpush3.bf16.msra.mxu0 %v3033_v33 }
 0xa96   : > { %v4434_v23 = vsel %vm2184_vm2, %v2226_v21, 0.0  ;;  %v2261_v0 = vmul.f32 %v4429_v56, %v4429_v56  ;;  %v2214_v55 = vmul.f32 0.005882353, %v2202_v17  ;;  %2279 = vadd.xlane.f32.xlu1 %v2278_v22  ;;  %2847 = vmatprep.subr.bf16.mxu0 %v3034_v26 }
 0xa97   : > { %v2262_v28 = vmul.f32 %v4434_v23, %v4434_v23 }
 0xa98   : > { %v4447_v53 = vsub.f32 %v4344_v6, %v2214_v55  ;;  %v2228_v20 = vsub.f32 %v4346_v62, %v2214_v55  ;;  %v3035_v62 = vld [vmem:[%s4636_s15 + $0x28] sm:$0xff]  }
 0xa99   : > { %v2205_v9 = vpop.xlane.xlu0 %2204  ;;  %v2281_v61 = vadd.f32 %v2262_v28, %v2261_v0  ;;  %2848 = vmatpush3.bf16.msra.mxu0 %v3035_v62 }
 0xa9a   : > { %v4452_v43 = vsel %vm2184_vm2, %v2228_v20, 0.0  ;;  %v2263_v48 = vmul.f32 %v4447_v53, %v4447_v53  ;;  %v2215_v27 = vmul.f32 0.005882353, %v2205_v9  ;;  %2849 = vmatprep.subr.bf16.mxu0 %v3036_v31 }
 0xa9b   : > { %v2264_v6 = vmul.f32 %v4452_v43, %v4452_v43  ;;  %2282 = vadd.xlane.f32.xlu0 %v2281_v61 }
 0xa9c   : > { %v4465_v44 = vsub.f32 %v4354_v49, %v2215_v27  ;;  %v2230_v7 = vsub.f32 %v4356_v35, %v2215_v27  ;;  %v3037_v35 = vld [vmem:[%s4636_s15 + $0x20] sm:$0xff]  }
 0xa9d   : > { %v2208_v57 = vpop.xlane.xlu1 %2207  ;;  %v2284_v5 = vadd.f32 %v2264_v6, %v2263_v48  ;;  %2850 = vmatpush3.bf16.msra.mxu0 %v3037_v35  ;;  %v2333_v48 = vld [vmem:[%s4634_s13] sm:$0x3] }
 0xa9e   : > { %v4470_v34 = vsel %vm2184_vm2, %v2230_v7, 0.0  ;;  %v2265_v60 = vmul.f32 %v4465_v44, %v4465_v44  ;;  %v2216_v40 = vmul.f32 0.005882353, %v2208_v57  ;;  %2851 = vmatprep.subr.bf16.mxu0 %v3038_v45  ;;  %v4522_v62 = vrot.slane %v2333_v48, %v3626_v12  ;;  %v2361_v57 = vld [vmem:[%s4635_s14] sm:$0x3] }
 0xa9f   : > { %v2266_v49 = vmul.f32 %v4470_v34, %v4470_v34  ;;  %2285 = vadd.xlane.f32.xlu1 %v2284_v5  ;;  %v4525_v7 = vrot.slane %v2333_v48, %v3633_v18  ;;  %v4536_v35 = vrot.slane %v2361_v57, %v3633_v18 }
 0xaa0   : > { %v4483_v39 = vsub.f32 %v4364_v47, %v2216_v40  ;;  %v2232_v2 = vsub.f32 %v4366_v14, %v2216_v40  ;;  %v3039_v14 = vld [vmem:[%s4636_s15 + $0x18] sm:$0xff]  }
 0xaa1   : > { %v2287_v58 = vadd.f32 %v2266_v49, %v2265_v60  ;;  %2852 = vmatpush3.bf16.msra.mxu0 %v3039_v14  ;;  %v4533_v49 = vrot.slane %v2361_v57, %v3626_v12 }
 0xaa2   : > { %v4488_v29 = vsel %vm2184_vm2, %v2232_v2, 0.0  ;;  %v2267_v3 = vmul.f32 %v4483_v39, %v4483_v39  ;;  %2853 = vmatprep.subr.bf16.mxu0 %v3040_v10 }
 0xaa3   : > { %v2268_v47 = vmul.f32 %v4488_v29, %v4488_v29  ;;  %2288 = vadd.xlane.f32.xlu0 %v2287_v58 }
 0xaa5   : > { %v2290_v38 = vadd.f32 %v2268_v47, %v2267_v3  ;;  %2854 = vmatpush3.bf16.msra.mxu0 %v3041_v15 }
 0xaa6   : > { %2855 = vmatprep.subr.bf16.mxu0 %v3042_v1 }
 0xaa7   : > { %2291 = vadd.xlane.f32.xlu1 %v2290_v38 }
 0xaa9   : > { %2856 = vmatpush3.bf16.msra.mxu0 %v3043_v25 }
 0xaaa   : > { %2857 = vmatprep.subr.bf16.mxu0 %v3044_v13 }
 0xaad   : > { %2858 = vmatpush3.bf16.msra.mxu0 %v3045_v4 }
 0xb13   : > { %v2271_v63 = vpop.xlane.xlu0 %2270 }
 0xb14   : > { %v2293_v21 = vmul.f32 0.005882353, %v2271_v63 }
 0xb16   : > { %v2301_v22 = vadd.f32 1e-06, %v2293_v21 }
 0xb17   : > { %v2274_v17 = vpop.xlane.xlu1 %2273 }
 0xb18   : > { %3174 = vrsqrt.f32 %v2301_v22  ;;  %v2294_v0 = vmul.f32 0.005882353, %v2274_v17 }
 0xb1a   : > { %v2302_v55 = vadd.f32 1e-06, %v2294_v0 }
 0xb1b   : > { %v2277_v46 = vpop.xlane.xlu0 %2276 }
 0xb1c   : > { %3176 = vrsqrt.f32 %v2302_v55  ;;  %v2295_v28 = vmul.f32 0.005882353, %v2277_v46 }
 0xb1e   : > { %v2303_v33 = vadd.f32 1e-06, %v2295_v28 }
 0xb1f   : > { %v2280_v20 = vpop.xlane.xlu1 %2279 }
 0xb20   : > { %3178 = vrsqrt.f32 %v2303_v33  ;;  %v2296_v9 = vmul.f32 0.005882353, %v2280_v20 }
 0xb22   : > { %v2304_v61 = vadd.f32 1e-06, %v2296_v9 }
 0xb24   : > { %3180 = vrsqrt.f32 %v2304_v61  ;;  %v2283_v27 = vpop.xlane.xlu0 %2282 }
 0xb25   : > { %v3175_v26 = vpop.eup %3174  ;;  %v2297_v6 = vmul.f32 0.005882353, %v2283_v27 }
 0xb26   : > { %v2317_v5 = vmul.f32 %v3175_v26, %v4381_v54  ;;  %v2318_v60 = vmul.f32 %v3175_v26, %v4386_v50 }
 0xb27   : > { %v2305_v40 = vadd.f32 1e-06, %v2297_v6 }
 0xb28   : > { %v2286_v31 = vpop.xlane.xlu1 %2285  ;;  %v2346_v3 = vmul.f32 %v4525_v7, %v2318_v60  ;;  %v2345_v45 = vmul.f32 %v4522_v62, %v2317_v5 }
 0xb29   : > { %v3177_v2 = vpop.eup %3176  ;;  %3182 = vrsqrt.f32 %v2305_v40  ;;  %v2298_v58 = vmul.f32 0.005882353, %v2286_v31 }
 0xb2a   : > { %v2319_v47 = vmul.f32 %v3177_v2, %v4393_v59  ;;  %v2320_v54 = vmul.f32 %v3177_v2, %v4398_v30  ;;  %v2374_v15 = vadd.f32 %v4536_v35, %v2346_v3  ;;  %v2373_v1 = vadd.f32 %v4533_v49, %v2345_v45 }
 0xb2b   : > { %v2306_v50 = vadd.f32 1e-06, %v2298_v58 }
 0xb2c   : > { %v2289_v14 = vpop.xlane.xlu0 %2288  ;;  %v2348_v38 = vmul.f32 %v4525_v7, %v2320_v54  ;;  %v2347_v12 = vmul.f32 %v4522_v62, %v2319_v47 }
 0xb2d   : > { %v3179_v10 = vpop.eup %3178  ;;  %3184 = vrsqrt.f32 %v2306_v50  ;;  %v2299_v18 = vmul.f32 0.005882353, %v2289_v14 }
 0xb2e   : > { %v2376_v25 = vadd.f32 %v4536_v35, %v2348_v38  ;;  %v2375_v13 = vadd.f32 %v4533_v49, %v2347_v12  ;;  %v2322_v59 = vmul.f32 %v3179_v10, %v4410_v41  ;;  %v2321_v30 = vmul.f32 %v3179_v10, %v4405_v16 }
 0xb2f   : > { %v2307_v4 = vadd.f32 1e-06, %v2299_v18 }
 0xb30   : > { %v2292_v63 = vpop.xlane.xlu1 %2291  ;;  %v2390_v21 = vpack.c.bf16 %v2376_v25, %v2374_v15  ;;  %v2389_v22 = vpack.c.bf16 %v2375_v13, %v2373_v1  ;;  %v2350_v46 = vmul.f32 %v4525_v7, %v2322_v59  ;;  %v2349_v33 = vmul.f32 %v4522_v62, %v2321_v30 }
 0xb31   : > { %v3181_v17 = vpop.eup %3180  ;;  %3186 = vrsqrt.f32 %v2307_v4  ;;  %v2300_v0 = vmul.f32 0.005882353, %v2292_v63 }
 0xb32   : > { %2564 = vmatprep.mubr.bf16.mxu0 %v2390_v21  ;;  %v2324_v55 = vmul.f32 %v3181_v17, %v4422_v42  ;;  %v2323_v28 = vmul.f32 %v3181_v17, %v4417_v52  ;;  %v2378_v61 = vadd.f32 %v4536_v35, %v2350_v46  ;;  %v2377_v42 = vadd.f32 %v4533_v49, %v2349_v33 }
 0xb33   : > { %v2308_v20 = vadd.f32 1e-06, %v2300_v0  ;;  %2565 = vmatmul.mubr.bf16.vlgmr.msra.gmra.mxu0 %v2389_v22 }
 0xb34   : > { %v2352_v16 = vmul.f32 %v4525_v7, %v2324_v55  ;;  %v2351_v41 = vmul.f32 %v4522_v62, %v2323_v28 }
 0xb35   : > { %3188 = vrsqrt.f32 %v2308_v20 }
 0xb36   : > { %v3183_v9 = vpop.eup %3182  ;;  %v2380_v48 = vadd.f32 %v4536_v35, %v2352_v16  ;;  %v2379_v27 = vadd.f32 %v4533_v49, %v2351_v41 }
 0xb37   : > { %v2326_v52 = vmul.f32 %v3183_v9, %v4434_v23  ;;  %v2325_v26 = vmul.f32 %v3183_v9, %v4429_v56 }
 0xb38   : > { %v2392_v6 = vpack.c.bf16 %v2380_v48, %v2378_v61  ;;  %v2391_v57 = vpack.c.bf16 %v2379_v27, %v2377_v42 }
 0xb39   : > { %v2354_v60 = vmul.f32 %v4525_v7, %v2326_v52  ;;  %v2353_v40 = vmul.f32 %v4522_v62, %v2325_v26 }
 0xb3a   : > { %v3185_v5 = vpop.eup %3184  ;;  %2572 = vmatprep.mubr.bf16.mxu0 %v2392_v6 }
 0xb3b   : > { %2573 = vmatmul.mubr.bf16.gmra.mxu0 %v2391_v57  ;;  %v2328_v31 = vmul.f32 %v3185_v5, %v4452_v43  ;;  %v2327_v2 = vmul.f32 %v3185_v5, %v4447_v53  ;;  %v2382_v56 = vadd.f32 %v4536_v35, %v2354_v60  ;;  %v2381_v45 = vadd.f32 %v4533_v49, %v2353_v40 }
 0xb3d   : > { %v2356_v58 = vmul.f32 %v4525_v7, %v2328_v31  ;;  %v2355_v3 = vmul.f32 %v4522_v62, %v2327_v2 }
 0xb3e   : > { %v3187_v23 = vpop.eup %3186 }
 0xb3f   : > { %v2384_v47 = vadd.f32 %v4536_v35, %v2356_v58  ;;  %v2383_v54 = vadd.f32 %v4533_v49, %v2355_v3  ;;  %v2330_v50 = vmul.f32 %v3187_v23, %v4470_v34  ;;  %v2329_v14 = vmul.f32 %v3187_v23, %v4465_v44 }
 0xb41   : > { %v2394_v43 = vpack.c.bf16 %v2384_v47, %v2382_v56  ;;  %v2393_v38 = vpack.c.bf16 %v2383_v54, %v2381_v45  ;;  %v2358_v10 = vmul.f32 %v4525_v7, %v2330_v50  ;;  %v2357_v15 = vmul.f32 %v4522_v62, %v2329_v14 }
 0xb42   : > { %v3189_v53 = vpop.eup %3188 }
 0xb43   : > { %2580 = vmatprep.mubr.bf16.mxu0 %v2394_v43  ;;  %v2332_v12 = vmul.f32 %v3189_v53, %v4488_v29  ;;  %v2331_v18 = vmul.f32 %v3189_v53, %v4483_v39  ;;  %v2386_v44 = vadd.f32 %v4536_v35, %v2358_v10  ;;  %v2385_v13 = vadd.f32 %v4533_v49, %v2357_v15 }
 0xb44   : > { %2581 = vmatmul.mubr.bf16.gmra.mxu0 %v2393_v38 }
 0xb45   : > { %v2360_v1 = vmul.f32 %v4525_v7, %v2332_v12  ;;  %v2359_v34 = vmul.f32 %v4522_v62, %v2331_v18  ;;  %v2800_v7 = vld [vmem:[%s4637_s16] ss:$0 sm:$0xff] }
 0xb47   : > { %v2388_v25 = vadd.f32 %v4536_v35, %v2360_v1  ;;  %v2387_v29 = vadd.f32 %v4533_v49, %v2359_v34 }
 0xb49   : > { %v2396_v59 = vpack.c.bf16 %v2388_v25, %v2386_v44  ;;  %v2395_v30 = vpack.c.bf16 %v2387_v29, %v2385_v13 }
 0xb4b   : > { %2588 = vmatprep.mubr.bf16.mxu0 %v2396_v59 }
 0xb4c   : > { %2589 = vmatmul.mubr.bf16.gmra.mxu0 %v2395_v30 }
 0xbf3   : > { %v2859_v39 = vpop.f32.mrf.mxu0 }
 0xbf5   : > { %v2860_v4 = vpop.f32.mrf.mxu0 }
 0xbf6   : > { %v2861_v63 = vadd.f32 %v2860_v4, %v2859_v39 }
 0xbf7   : > { %v2862_v62 = vpop.f32.mrf.mxu0 }
 0xbf8   : > { %v2567_v21 = vadd.f32 %v2861_v63, %v2800_v7 }
 0xbf9   : > { %v2863_v49 = vpop.f32.mrf.mxu0 }
 0xbfa   : > { %v2597_v35 = vadd.f32 %v2567_v21, %v4015_v8  ;;  %v2864_v22 = vadd.f32 %v2863_v49, %v2862_v62 }
 0xbfb   : > { %v2865_v17 = vpop.f32.mrf.mxu0 }
 0xbfc   : > { %2605 = vst.msk [vmem:[%s4592_s26] sm:$0xff] %vm632_vm0, %v2597_v35  ;;  %v2570_v0 = vadd.f32 %v2864_v22, %v2800_v7 }
 0xbfd   : > { %v2866_v55 = vpop.f32.mrf.mxu0 }
 0xbfe   : > { %v2598_v46 = vadd.f32 %v2570_v0, %v4023_v36  ;;  %v2867_v28 = vadd.f32 %v2866_v55, %v2865_v17 }
 0xbff   : > { %v2868_v33 = vpop.f32.mrf.mxu0 }
 0xc00   : > { %2606 = vst.msk [vmem:[%s4592_s26 + $0x8] sm:$0xff] %vm632_vm0, %v2598_v46  ;;  %v2575_v20 = vadd.f32 %v2867_v28, %v2800_v7 }
 0xc01   : > { %v2869_v16 = vpop.f32.mrf.mxu0 }
 0xc02   : > { %v2599_v41 = vadd.f32 %v2575_v20, %v4018_v51  ;;  %v2870_v9 = vadd.f32 %v2869_v16, %v2868_v33 }
 0xc04   : > { %2607 = vst.msk [vmem:[%s4592_s26 + $0x10] sm:$0xff] %vm632_vm0, %v2599_v41  ;;  %v2578_v8 = vadd.f32 %v2870_v9, %v2800_v7  ;;  %v2871_v61 = vpop.f32.mrf.mxu0 }
 0xc06   : > { %v2600_v48 = vadd.f32 %v2578_v8, %v4026_v24  ;;  %v2872_v42 = vpop.f32.mrf.mxu0 }
 0xc07   : > { %v2873_v27 = vadd.f32 %v2872_v42, %v2871_v61 }
 0xc08   : > { %2608 = vst.msk [vmem:[%s4592_s26 + $0x18] sm:$0xff] %vm632_vm0, %v2600_v48  ;;  %v2874_v36 = vpop.f32.mrf.mxu0 }
 0xc09   : > { %v2583_v52 = vadd.f32 %v2873_v27, %v2800_v7 }
 0xc0a   : > { %v2875_v26 = vpop.f32.mrf.mxu0 }
 0xc0b   : > { %v2601_v6 = vadd.f32 %v2583_v52, %v4033_v32  ;;  %v2876_v57 = vadd.f32 %v2875_v26, %v2874_v36 }
 0xc0c   : > { %v2877_v51 = vpop.f32.mrf.mxu0 }
 0xc0d   : > { %2609 = vst.msk [vmem:[%s4592_s26 + $0x20] sm:$0xff] %vm632_vm0, %v2601_v6  ;;  %v2586_v5 = vadd.f32 %v2876_v57, %v2800_v7 }
 0xc0e   : > { %v2878_v60 = vpop.f32.mrf.mxu0 }
 0xc0f   : > { %v2602_v24 = vadd.f32 %v2586_v5, %v4043_v11  ;;  %v2879_v40 = vadd.f32 %v2878_v60, %v2877_v51 }
 0xc10   : > { %v2880_v31 = vpop.f32.mrf.mxu0 }
 0xc11   : > { %2610 = vst.msk [vmem:[%s4592_s26 + $0x28] sm:$0xff] %vm632_vm0, %v2602_v24  ;;  %v2591_v2 = vadd.f32 %v2879_v40, %v2800_v7 }
 0xc12   : > { %v2881_v58 = vpop.f32.mrf.mxu0 }
 0xc13   : > { %v2603_v3 = vadd.f32 %v2591_v2, %v4038_v37  ;;  %v2882_v23 = vadd.f32 %v2881_v58, %v2880_v31 }
 0xc15   : > { %2611 = vst.msk [vmem:[%s4592_s26 + $0x30] sm:$0xff] %vm632_vm0, %v2603_v3  ;;  %v2594_v32 = vadd.f32 %v2882_v23, %v2800_v7 }
 0xc17   : > { %v2604_v56 = vadd.f32 %v2594_v32, %v4046_v19 }
 0xc19   : > { %2612 = vst.msk [vmem:[%s4592_s26 + $0x38] sm:$0xff] %vm632_vm0, %v2604_v56 }
 0xc1a PF: > { %s30_s24 = sadd.s32 1, %s3320_s24  }
 0xc1b   : > { %p27_p2 = scmp.ge.s32.totalorder %s30_s24, 4  }
 0xc1d   :  { %29 = sbr.rel (!%p27_p2) target bundleno = 6 (0x6), region = 135 }
 0xc22   :  { %2635 = vsyncpa [#allocation3], 1 }
 0xc23   :  { %2637 = vsyncpa [#allocation3 + $0x1], 1 }
 0xc24   :  { %2638 = vsyncpa [#allocation5], 1 }
 0xc25   :  { %2639 = vsyncpa [#allocation8], 1 }

</bundles_post_ra>
